<compile_context>
chip_gen: v7x
topology: tpu7x:2x2x1
jax: 0.10.0
libtpu: 0.0.40
codegen_flags: <defaults>
</compile_context>

<pallas_src>
import math

import jax
import jax.numpy as jnp
from jax import lax
from jax.experimental import pallas as pl
from jax.experimental.pallas import tpu as pltpu

# ----------------------------- config ---------------------------------------
D_MODEL = 32
NHEAD = 4
NUM_BLOCKS = 2
DIM_FF = 64
MAX_LEN = 16
BATCH = 2
FRAMES = 7             # <= MAX_LEN
SEQ = FRAMES + 1       # +1 for the cls token
N_TOK = BATCH * SEQ    # flattened token count
DH = D_MODEL // NHEAD  # head dim
LN_EPS = 1e-5
NEG_INF = -1e30


# ----------------------------- kernel ---------------------------------------
def _layernorm(x, gamma, beta):
    mu = jnp.mean(x, axis=-1, keepdims=True)
    xc = x - mu
    var = jnp.mean(xc * xc, axis=-1, keepdims=True)
    return xc * lax.rsqrt(var + LN_EPS) * gamma + beta


def fused_encoder_kernel(x_ref, add_ref, bias_ref, sel_ref,
                         wqkv_ref, bqkv_ref, wo_ref, bo_ref,
                         g1_ref, be1_ref, w1_ref, b1_ref,
                         w2_ref, b2_ref, g2_ref, be2_ref,
                         o_ref):
    # x_ref   : (N_TOK, D)  cls slots are zero; value comes from add_ref
    # add_ref : (N_TOK, D)  positional encodings (+ cls embedding at cls rows)
    # bias_ref: (N_TOK, N_TOK) additive attention bias
    #           (0 for same-batch, unpadded key; -1e30 otherwise)
    # sel_ref : (B, N_TOK)  one-hot rows selecting each batch's cls token
    # weights : stacked over layers with leading NUM_BLOCKS dim,
    #           pre-transposed, attention scale folded into Q columns
    # o_ref   : (B, D)      output = cls-row of each batch element

    h = x_ref[...] + add_ref[...]            # (N, D) assembled input, f32
    bias = bias_ref[...]                     # (N, N)

    for l in range(NUM_BLOCKS):              # static unroll over layers
        # ---- fused QKV projection: one (N,D) @ (D,3D) matmul ----
        qkv = jnp.dot(h, wqkv_ref[l],
                      preferred_element_type=jnp.float32) + bqkv_ref[l]
        q = qkv[:, 0:D_MODEL]                # already scaled by 1/sqrt(DH)
        k = qkv[:, D_MODEL:2 * D_MODEL]
        v = qkv[:, 2 * D_MODEL:3 * D_MODEL]

        # ---- multi-head attention, concat-free: accumulate through Wo^T ----
        wo_t = wo_ref[l]                                    # (D, D)
        attn = jnp.zeros((N_TOK, D_MODEL), jnp.float32)
        for hh in range(NHEAD):                             # static unroll
            sl = slice(hh * DH, (hh + 1) * DH)
            qh = q[:, sl]
            kh = k[:, sl]
            vh = v[:, sl]
            # scores = qh @ kh.T (contract last dims, no explicit .T)
            s = lax.dot_general(qh, kh, (((1,), (1,)), ((), ())),
                                preferred_element_type=jnp.float32)
            s = s + bias
            s = s - jnp.max(s, axis=-1, keepdims=True)
            e = jnp.exp(s)
            p = e * pl.reciprocal(jnp.sum(e, axis=-1, keepdims=True),
                                  approx=True)
            oh = jnp.dot(p, vh, preferred_element_type=jnp.float32)  # (N, DH)
            attn = attn + jnp.dot(oh, wo_t[sl, :],
                                  preferred_element_type=jnp.float32)
        attn = attn + bo_ref[l]

        # ---- residual + LayerNorm 1 (post-norm; dropout = identity, eval) ----
        h = _layernorm(h + attn, g1_ref[l], be1_ref[l])

        # ---- feed-forward: linear -> relu -> linear ----
        hid = jnp.maximum(
            jnp.dot(h, w1_ref[l], preferred_element_type=jnp.float32)
            + b1_ref[l], 0.0)
        ff = jnp.dot(hid, w2_ref[l],
                     preferred_element_type=jnp.float32) + b2_ref[l]

        # ---- residual + LayerNorm 2 ----
        h = _layernorm(h + ff, g2_ref[l], be2_ref[l])

    # ---- output[:, 0]: cls row of each batch element via selection matmul ----
    o_ref[...] = jnp.dot(sel_ref[...], h, preferred_element_type=jnp.float32)


# ---------------------------- parameters -------------------------------------
def init_params(key):
    """Synthetic params, already packed in kernel-friendly layout:
       stacked over layers, fused QKV, pre-transposed (x @ W form),
       attention scale folded into the Q columns/bias."""
    keys = jax.random.split(key, 1 + NUM_BLOCKS)
    pos_emb = 0.02 * jax.random.normal(
        keys[0], (MAX_LEN + 2, D_MODEL), jnp.float32)

    s = 0.05
    scale = 1.0 / math.sqrt(DH)
    wqkv, bqkv, wo, bo = [], [], [], []
    g1, be1, w1, b1, w2, b2, g2, be2 = [], [], [], [], [], [], [], []
    for l in range(NUM_BLOCKS):
        lk = jax.random.split(keys[1 + l], 6)
        wq = s * jax.random.normal(lk[0], (D_MODEL, D_MODEL), jnp.float32)
        wk = s * jax.random.normal(lk[1], (D_MODEL, D_MODEL), jnp.float32)
        wv = s * jax.random.normal(lk[2], (D_MODEL, D_MODEL), jnp.float32)
        # PyTorch computes q = x @ Wq.T; fuse, pre-transpose and fold the
        # softmax scale into the Q columns -> x @ [scale*Wq.T | Wk.T | Wv.T]
        wqkv.append(jnp.concatenate([scale * wq.T, wk.T, wv.T], axis=1))
        bq = jnp.zeros((1, D_MODEL), jnp.float32)
        bk = jnp.zeros((1, D_MODEL), jnp.float32)
        bv = jnp.zeros((1, D_MODEL), jnp.float32)
        bqkv.append(jnp.concatenate([scale * bq, bk, bv], axis=1))   # (1, 3D)
        wo_l = s * jax.random.normal(lk[3], (D_MODEL, D_MODEL), jnp.float32)
        wo.append(wo_l.T)                                            # (D, D)
        bo.append(jnp.zeros((1, D_MODEL), jnp.float32))
        g1.append(jnp.ones((1, D_MODEL), jnp.float32))
        be1.append(jnp.zeros((1, D_MODEL), jnp.float32))
        w1_l = s * jax.random.normal(lk[4], (DIM_FF, D_MODEL), jnp.float32)
        w1.append(w1_l.T)                                            # (D, Dff)
        b1.append(jnp.zeros((1, DIM_FF), jnp.float32))
        w2_l = s * jax.random.normal(lk[5], (D_MODEL, DIM_FF), jnp.float32)
        w2.append(w2_l.T)                                            # (Dff, D)
        b2.append(jnp.zeros((1, D_MODEL), jnp.float32))
        g2.append(jnp.ones((1, D_MODEL), jnp.float32))
        be2.append(jnp.zeros((1, D_MODEL), jnp.float32))

    st = lambda xs: jnp.stack(xs, axis=0)
    return dict(pos_emb=pos_emb,
                wqkv=st(wqkv), bqkv=st(bqkv), wo=st(wo), bo=st(bo),
                g1=st(g1), be1=st(be1), w1=st(w1), b1=st(b1),
                w2=st(w2), b2=st(b2), g2=st(g2), be2=st(be2))


# -------------------------- full module forward ------------------------------
@jax.jit
def encode_video_segment(params, x, attention_mask):
    """x: (B, frames, D); attention_mask: (B, frames+1), 1.0 == pad.
       Returns (B, D) = encoder output at the cls position."""
    B, F, D = x.shape
    S = F + 1
    N = B * S
    pos = params["pos_emb"]

    # Per-position additive term; cls rows get cls-token embedding + pos[0].
    addend = jnp.concatenate([(pos[MAX_LEN] + pos[0])[None, :], pos[1:S]],
                             axis=0)                       # (S, D)
    addend = jnp.tile(addend, (B, 1))                      # (N, D)

    # Open the cls slot with zeros (value injected in-kernel via `addend`),
    # then flatten batch x seq so the kernel works on one (N, D) slab.
    xflat = jnp.pad(x, ((0, 0), (1, 0), (0, 0))).reshape(N, D)

    # Additive attention bias: block-diagonal over batches + key padding.
    tok = jnp.arange(N)
    same_batch = (tok[:, None] // S) == (tok[None, :] // S)
    key_ok = (attention_mask.astype(jnp.float32).reshape(N) < 0.5)[None, :]
    bias = jnp.where(same_batch & key_ok, 0.0, NEG_INF).astype(jnp.float32)

    # One-hot selection of each batch element's cls token (row 0 of its block).
    sel = (tok[None, :] == (jnp.arange(B) * S)[:, None]).astype(jnp.float32)

    vmem_spec = pl.BlockSpec(memory_space=pltpu.MemorySpace.VMEM)
    out = pl.pallas_call(
        fused_encoder_kernel,
        out_shape=jax.ShapeDtypeStruct((B, D), jnp.float32),
        in_specs=[vmem_spec] * 16,
        out_specs=vmem_spec,
    )(xflat, addend, bias, sel,
      params["wqkv"], params["bqkv"], params["wo"], params["bo"],
      params["g1"], params["be1"], params["w1"], params["b1"],
      params["w2"], params["b2"], params["g2"], params["be2"])
    return out


# ------------------------------- main ----------------------------------------
if __name__ == "__main__":
    key = jax.random.PRNGKey(0)
    pkey, xkey = jax.random.split(key)

    params = init_params(pkey)

    x = jax.random.normal(xkey, (BATCH, FRAMES, D_MODEL), jnp.float32)

    # attention mask over (cls + frames): 0 = attend, 1 = pad.
    # batch 0: nothing padded; batch 1: last two frames padded.
    attention_mask = jnp.zeros((BATCH, SEQ), jnp.float32)
    attention_mask = attention_mask.at[1, -2:].set(1.0)

    out = encode_video_segment(params, x, attention_mask)
    out = jax.block_until_ready(out)

    assert out.shape == (BATCH, D_MODEL)
    assert jnp.all(jnp.isfinite(out))
    print("KERNEL_OK")
</pallas_src>

<mosaic_0001>
module attributes {stable_mosaic.version = 11 : i64} {
  func.func @fused_encoder_kernel(%arg0: memref<16x32xf32, #tpu.memory_space<vmem>>, %arg1: memref<16x32xf32, #tpu.memory_space<vmem>>, %arg2: memref<16x16xf32, #tpu.memory_space<vmem>>, %arg3: memref<2x16xf32, #tpu.memory_space<vmem>>, %arg4: memref<2x32x96xf32, #tpu.memory_space<vmem>>, %arg5: memref<2x1x96xf32, #tpu.memory_space<vmem>>, %arg6: memref<2x32x32xf32, #tpu.memory_space<vmem>>, %arg7: memref<2x1x32xf32, #tpu.memory_space<vmem>>, %arg8: memref<2x1x32xf32, #tpu.memory_space<vmem>>, %arg9: memref<2x1x32xf32, #tpu.memory_space<vmem>>, %arg10: memref<2x32x64xf32, #tpu.memory_space<vmem>>, %arg11: memref<2x1x64xf32, #tpu.memory_space<vmem>>, %arg12: memref<2x64x32xf32, #tpu.memory_space<vmem>>, %arg13: memref<2x1x32xf32, #tpu.memory_space<vmem>>, %arg14: memref<2x1x32xf32, #tpu.memory_space<vmem>>, %arg15: memref<2x1x32xf32, #tpu.memory_space<vmem>>, %arg16: memref<2x32xf32, #tpu.memory_space<vmem>>) attributes {dimension_semantics = [], scalar_prefetch = 0 : i64, scratch_operands = 0 : i64, tpu.core_type = #tpu.core_type<tc>} {
    %c0 = arith.constant 0 : index
    %c0_0 = arith.constant 0 : index
    %0 = vector.load %arg0[%c0, %c0_0] : memref<16x32xf32, #tpu.memory_space<vmem>>, vector<16x32xf32>
    %c0_1 = arith.constant 0 : index
    %c0_2 = arith.constant 0 : index
    %1 = vector.load %arg1[%c0_1, %c0_2] : memref<16x32xf32, #tpu.memory_space<vmem>>, vector<16x32xf32>
    %2 = arith.addf %0, %1 : vector<16x32xf32>
    %c0_3 = arith.constant 0 : index
    %c0_4 = arith.constant 0 : index
    %3 = vector.load %arg2[%c0_3, %c0_4] : memref<16x16xf32, #tpu.memory_space<vmem>>, vector<16x16xf32>
    %c0_5 = arith.constant 0 : index
    %c0_6 = arith.constant 0 : index
    %c0_7 = arith.constant 0 : index
    %4 = vector.load %arg4[%c0_5, %c0_6, %c0_7] : memref<2x32x96xf32, #tpu.memory_space<vmem>>, vector<1x32x96xf32>
    %5 = vector.shape_cast %4 : vector<1x32x96xf32> to vector<32x96xf32>
    %cst = arith.constant dense<0.000000e+00> : vector<16x96xf32>
    %6 = tpu.matmul %2, %5, %cst {dimension_numbers = #tpu.dot_dimension_numbers<[1], [0], [0], [1], [0, 0, 1, 1], [], []>} : vector<16x32xf32>, vector<32x96xf32>, vector<16x96xf32> -> vector<16x96xf32>
    %c0_8 = arith.constant 0 : index
    %c0_9 = arith.constant 0 : index
    %c0_10 = arith.constant 0 : index
    %7 = vector.load %arg5[%c0_8, %c0_9, %c0_10] : memref<2x1x96xf32, #tpu.memory_space<vmem>>, vector<1x1x96xf32>
    %8 = vector.shape_cast %7 : vector<1x1x96xf32> to vector<1x96xf32>
    %9 = vector.broadcast %8 : vector<1x96xf32> to vector<16x96xf32>
    %10 = arith.addf %6, %9 : vector<16x96xf32>
    %11 = vector.extract_strided_slice %10 {offsets = [0, 0], sizes = [16, 32], strides = [1, 1]} : vector<16x96xf32> to vector<16x32xf32>
    %12 = vector.extract_strided_slice %10 {offsets = [0, 32], sizes = [16, 32], strides = [1, 1]} : vector<16x96xf32> to vector<16x32xf32>
    %13 = vector.extract_strided_slice %10 {offsets = [0, 64], sizes = [16, 32], strides = [1, 1]} : vector<16x96xf32> to vector<16x32xf32>
    %c0_11 = arith.constant 0 : index
    %c0_12 = arith.constant 0 : index
    %c0_13 = arith.constant 0 : index
    %14 = vector.load %arg6[%c0_11, %c0_12, %c0_13] : memref<2x32x32xf32, #tpu.memory_space<vmem>>, vector<1x32x32xf32>
    %15 = vector.shape_cast %14 : vector<1x32x32xf32> to vector<32x32xf32>
    %cst_14 = arith.constant 0.000000e+00 : f32
    %16 = vector.broadcast %cst_14 : f32 to vector<16x32xf32>
    %17 = vector.extract_strided_slice %11 {offsets = [0, 0], sizes = [16, 8], strides = [1, 1]} : vector<16x32xf32> to vector<16x8xf32>
    %18 = vector.extract_strided_slice %12 {offsets = [0, 0], sizes = [16, 8], strides = [1, 1]} : vector<16x32xf32> to vector<16x8xf32>
    %19 = vector.extract_strided_slice %13 {offsets = [0, 0], sizes = [16, 8], strides = [1, 1]} : vector<16x32xf32> to vector<16x8xf32>
    %cst_15 = arith.constant dense<0.000000e+00> : vector<16x16xf32>
    %20 = tpu.matmul %17, %18, %cst_15 {dimension_numbers = #tpu.dot_dimension_numbers<[1], [1], [0], [0], [0, 0, 1, 0], [], []>} : vector<16x8xf32>, vector<16x8xf32>, vector<16x16xf32> -> vector<16x16xf32>
    %21 = arith.addf %20, %3 : vector<16x16xf32>
    %cst_16 = arith.constant dense<0xFF800000> : vector<16xf32>
    %22 = vector.multi_reduction <maximumf>, %21, %cst_16 [1] : vector<16x16xf32> to vector<16xf32>
    %23 = vector.shape_cast %22 : vector<16xf32> to vector<16x1xf32>
    %24 = vector.broadcast %23 : vector<16x1xf32> to vector<16x16xf32>
    %25 = arith.subf %21, %24 : vector<16x16xf32>
    %26 = math.exp %25 : vector<16x16xf32>
    %cst_17 = arith.constant dense<0.000000e+00> : vector<16xf32>
    %27 = vector.multi_reduction <add>, %26, %cst_17 [1] : vector<16x16xf32> to vector<16xf32>
    %28 = vector.shape_cast %27 : vector<16xf32> to vector<16x1xf32>
    %29 = tpu.reciprocal %28 {approx = true} : vector<16x1xf32> -> vector<16x1xf32>
    %30 = vector.broadcast %29 : vector<16x1xf32> to vector<16x16xf32>
    %31 = arith.mulf %26, %30 : vector<16x16xf32>
    %cst_18 = arith.constant dense<0.000000e+00> : vector<16x8xf32>
    %32 = tpu.matmul %31, %19, %cst_18 {dimension_numbers = #tpu.dot_dimension_numbers<[1], [0], [0], [1], [0, 0, 1, 1], [], []>} : vector<16x16xf32>, vector<16x8xf32>, vector<16x8xf32> -> vector<16x8xf32>
    %33 = vector.extract_strided_slice %15 {offsets = [0, 0], sizes = [8, 32], strides = [1, 1]} : vector<32x32xf32> to vector<8x32xf32>
    %cst_19 = arith.constant dense<0.000000e+00> : vector<16x32xf32>
    %34 = tpu.matmul %32, %33, %cst_19 {dimension_numbers = #tpu.dot_dimension_numbers<[1], [0], [0], [1], [0, 0, 1, 1], [], []>} : vector<16x8xf32>, vector<8x32xf32>, vector<16x32xf32> -> vector<16x32xf32>
    %35 = arith.addf %16, %34 : vector<16x32xf32>
    %36 = vector.extract_strided_slice %11 {offsets = [0, 8], sizes = [16, 8], strides = [1, 1]} : vector<16x32xf32> to vector<16x8xf32>
    %37 = vector.extract_strided_slice %12 {offsets = [0, 8], sizes = [16, 8], strides = [1, 1]} : vector<16x32xf32> to vector<16x8xf32>
    %38 = vector.extract_strided_slice %13 {offsets = [0, 8], sizes = [16, 8], strides = [1, 1]} : vector<16x32xf32> to vector<16x8xf32>
    %cst_20 = arith.constant dense<0.000000e+00> : vector<16x16xf32>
    %39 = tpu.matmul %36, %37, %cst_20 {dimension_numbers = #tpu.dot_dimension_numbers<[1], [1], [0], [0], [0, 0, 1, 0], [], []>} : vector<16x8xf32>, vector<16x8xf32>, vector<16x16xf32> -> vector<16x16xf32>
    %40 = arith.addf %39, %3 : vector<16x16xf32>
    %cst_21 = arith.constant dense<0xFF800000> : vector<16xf32>
    %41 = vector.multi_reduction <maximumf>, %40, %cst_21 [1] : vector<16x16xf32> to vector<16xf32>
    %42 = vector.shape_cast %41 : vector<16xf32> to vector<16x1xf32>
    %43 = vector.broadcast %42 : vector<16x1xf32> to vector<16x16xf32>
    %44 = arith.subf %40, %43 : vector<16x16xf32>
    %45 = math.exp %44 : vector<16x16xf32>
    %cst_22 = arith.constant dense<0.000000e+00> : vector<16xf32>
    %46 = vector.multi_reduction <add>, %45, %cst_22 [1] : vector<16x16xf32> to vector<16xf32>
    %47 = vector.shape_cast %46 : vector<16xf32> to vector<16x1xf32>
    %48 = tpu.reciprocal %47 {approx = true} : vector<16x1xf32> -> vector<16x1xf32>
    %49 = vector.broadcast %48 : vector<16x1xf32> to vector<16x16xf32>
    %50 = arith.mulf %45, %49 : vector<16x16xf32>
    %cst_23 = arith.constant dense<0.000000e+00> : vector<16x8xf32>
    %51 = tpu.matmul %50, %38, %cst_23 {dimension_numbers = #tpu.dot_dimension_numbers<[1], [0], [0], [1], [0, 0, 1, 1], [], []>} : vector<16x16xf32>, vector<16x8xf32>, vector<16x8xf32> -> vector<16x8xf32>
    %52 = vector.extract_strided_slice %15 {offsets = [8, 0], sizes = [8, 32], strides = [1, 1]} : vector<32x32xf32> to vector<8x32xf32>
    %cst_24 = arith.constant dense<0.000000e+00> : vector<16x32xf32>
    %53 = tpu.matmul %51, %52, %cst_24 {dimension_numbers = #tpu.dot_dimension_numbers<[1], [0], [0], [1], [0, 0, 1, 1], [], []>} : vector<16x8xf32>, vector<8x32xf32>, vector<16x32xf32> -> vector<16x32xf32>
    %54 = arith.addf %35, %53 : vector<16x32xf32>
    %55 = vector.extract_strided_slice %11 {offsets = [0, 16], sizes = [16, 8], strides = [1, 1]} : vector<16x32xf32> to vector<16x8xf32>
    %56 = vector.extract_strided_slice %12 {offsets = [0, 16], sizes = [16, 8], strides = [1, 1]} : vector<16x32xf32> to vector<16x8xf32>
    %57 = vector.extract_strided_slice %13 {offsets = [0, 16], sizes = [16, 8], strides = [1, 1]} : vector<16x32xf32> to vector<16x8xf32>
    %cst_25 = arith.constant dense<0.000000e+00> : vector<16x16xf32>
    %58 = tpu.matmul %55, %56, %cst_25 {dimension_numbers = #tpu.dot_dimension_numbers<[1], [1], [0], [0], [0, 0, 1, 0], [], []>} : vector<16x8xf32>, vector<16x8xf32>, vector<16x16xf32> -> vector<16x16xf32>
    %59 = arith.addf %58, %3 : vector<16x16xf32>
    %cst_26 = arith.constant dense<0xFF800000> : vector<16xf32>
    %60 = vector.multi_reduction <maximumf>, %59, %cst_26 [1] : vector<16x16xf32> to vector<16xf32>
    %61 = vector.shape_cast %60 : vector<16xf32> to vector<16x1xf32>
    %62 = vector.broadcast %61 : vector<16x1xf32> to vector<16x16xf32>
    %63 = arith.subf %59, %62 : vector<16x16xf32>
    %64 = math.exp %63 : vector<16x16xf32>
    %cst_27 = arith.constant dense<0.000000e+00> : vector<16xf32>
    %65 = vector.multi_reduction <add>, %64, %cst_27 [1] : vector<16x16xf32> to vector<16xf32>
    %66 = vector.shape_cast %65 : vector<16xf32> to vector<16x1xf32>
    %67 = tpu.reciprocal %66 {approx = true} : vector<16x1xf32> -> vector<16x1xf32>
    %68 = vector.broadcast %67 : vector<16x1xf32> to vector<16x16xf32>
    %69 = arith.mulf %64, %68 : vector<16x16xf32>
    %cst_28 = arith.constant dense<0.000000e+00> : vector<16x8xf32>
    %70 = tpu.matmul %69, %57, %cst_28 {dimension_numbers = #tpu.dot_dimension_numbers<[1], [0], [0], [1], [0, 0, 1, 1], [], []>} : vector<16x16xf32>, vector<16x8xf32>, vector<16x8xf32> -> vector<16x8xf32>
    %71 = vector.extract_strided_slice %15 {offsets = [16, 0], sizes = [8, 32], strides = [1, 1]} : vector<32x32xf32> to vector<8x32xf32>
    %cst_29 = arith.constant dense<0.000000e+00> : vector<16x32xf32>
    %72 = tpu.matmul %70, %71, %cst_29 {dimension_numbers = #tpu.dot_dimension_numbers<[1], [0], [0], [1], [0, 0, 1, 1], [], []>} : vector<16x8xf32>, vector<8x32xf32>, vector<16x32xf32> -> vector<16x32xf32>
    %73 = arith.addf %54, %72 : vector<16x32xf32>
    %74 = vector.extract_strided_slice %11 {offsets = [0, 24], sizes = [16, 8], strides = [1, 1]} : vector<16x32xf32> to vector<16x8xf32>
    %75 = vector.extract_strided_slice %12 {offsets = [0, 24], sizes = [16, 8], strides = [1, 1]} : vector<16x32xf32> to vector<16x8xf32>
    %76 = vector.extract_strided_slice %13 {offsets = [0, 24], sizes = [16, 8], strides = [1, 1]} : vector<16x32xf32> to vector<16x8xf32>
    %cst_30 = arith.constant dense<0.000000e+00> : vector<16x16xf32>
    %77 = tpu.matmul %74, %75, %cst_30 {dimension_numbers = #tpu.dot_dimension_numbers<[1], [1], [0], [0], [0, 0, 1, 0], [], []>} : vector<16x8xf32>, vector<16x8xf32>, vector<16x16xf32> -> vector<16x16xf32>
    %78 = arith.addf %77, %3 : vector<16x16xf32>
    %cst_31 = arith.constant dense<0xFF800000> : vector<16xf32>
    %79 = vector.multi_reduction <maximumf>, %78, %cst_31 [1] : vector<16x16xf32> to vector<16xf32>
    %80 = vector.shape_cast %79 : vector<16xf32> to vector<16x1xf32>
    %81 = vector.broadcast %80 : vector<16x1xf32> to vector<16x16xf32>
    %82 = arith.subf %78, %81 : vector<16x16xf32>
    %83 = math.exp %82 : vector<16x16xf32>
    %cst_32 = arith.constant dense<0.000000e+00> : vector<16xf32>
    %84 = vector.multi_reduction <add>, %83, %cst_32 [1] : vector<16x16xf32> to vector<16xf32>
    %85 = vector.shape_cast %84 : vector<16xf32> to vector<16x1xf32>
    %86 = tpu.reciprocal %85 {approx = true} : vector<16x1xf32> -> vector<16x1xf32>
    %87 = vector.broadcast %86 : vector<16x1xf32> to vector<16x16xf32>
    %88 = arith.mulf %83, %87 : vector<16x16xf32>
    %cst_33 = arith.constant dense<0.000000e+00> : vector<16x8xf32>
    %89 = tpu.matmul %88, %76, %cst_33 {dimension_numbers = #tpu.dot_dimension_numbers<[1], [0], [0], [1], [0, 0, 1, 1], [], []>} : vector<16x16xf32>, vector<16x8xf32>, vector<16x8xf32> -> vector<16x8xf32>
    %90 = vector.extract_strided_slice %15 {offsets = [24, 0], sizes = [8, 32], strides = [1, 1]} : vector<32x32xf32> to vector<8x32xf32>
    %cst_34 = arith.constant dense<0.000000e+00> : vector<16x32xf32>
    %91 = tpu.matmul %89, %90, %cst_34 {dimension_numbers = #tpu.dot_dimension_numbers<[1], [0], [0], [1], [0, 0, 1, 1], [], []>} : vector<16x8xf32>, vector<8x32xf32>, vector<16x32xf32> -> vector<16x32xf32>
    %92 = arith.addf %73, %91 : vector<16x32xf32>
    %c0_35 = arith.constant 0 : index
    %c0_36 = arith.constant 0 : index
    %c0_37 = arith.constant 0 : index
    %93 = vector.load %arg7[%c0_35, %c0_36, %c0_37] : memref<2x1x32xf32, #tpu.memory_space<vmem>>, vector<1x1x32xf32>
    %94 = vector.shape_cast %93 : vector<1x1x32xf32> to vector<1x32xf32>
    %95 = vector.broadcast %94 : vector<1x32xf32> to vector<16x32xf32>
    %96 = arith.addf %92, %95 : vector<16x32xf32>
    %97 = arith.addf %2, %96 : vector<16x32xf32>
    %c0_38 = arith.constant 0 : index
    %c0_39 = arith.constant 0 : index
    %c0_40 = arith.constant 0 : index
    %98 = vector.load %arg8[%c0_38, %c0_39, %c0_40] : memref<2x1x32xf32, #tpu.memory_space<vmem>>, vector<1x1x32xf32>
    %99 = vector.shape_cast %98 : vector<1x1x32xf32> to vector<1x32xf32>
    %c0_41 = arith.constant 0 : index
    %c0_42 = arith.constant 0 : index
    %c0_43 = arith.constant 0 : index
    %100 = vector.load %arg9[%c0_41, %c0_42, %c0_43] : memref<2x1x32xf32, #tpu.memory_space<vmem>>, vector<1x1x32xf32>
    %101 = vector.shape_cast %100 : vector<1x1x32xf32> to vector<1x32xf32>
    %cst_44 = arith.constant dense<0.000000e+00> : vector<16xf32>
    %102 = vector.multi_reduction <add>, %97, %cst_44 [1] : vector<16x32xf32> to vector<16xf32>
    %103 = vector.shape_cast %102 : vector<16xf32> to vector<16x1xf32>
    %cst_45 = arith.constant 3.200000e+01 : f32
    %104 = vector.broadcast %cst_45 : f32 to vector<16x1xf32>
    %105 = arith.divf %103, %104 : vector<16x1xf32>
    %106 = vector.broadcast %105 : vector<16x1xf32> to vector<16x32xf32>
    %107 = arith.subf %97, %106 : vector<16x32xf32>
    %108 = arith.mulf %107, %107 : vector<16x32xf32>
    %cst_46 = arith.constant dense<0.000000e+00> : vector<16xf32>
    %109 = vector.multi_reduction <add>, %108, %cst_46 [1] : vector<16x32xf32> to vector<16xf32>
    %110 = vector.shape_cast %109 : vector<16xf32> to vector<16x1xf32>
    %cst_47 = arith.constant 3.200000e+01 : f32
    %111 = vector.broadcast %cst_47 : f32 to vector<16x1xf32>
    %112 = arith.divf %110, %111 : vector<16x1xf32>
    %cst_48 = arith.constant 9.99999974E-6 : f32
    %113 = vector.broadcast %cst_48 : f32 to vector<16x1xf32>
    %114 = arith.addf %112, %113 : vector<16x1xf32>
    %115 = math.rsqrt %114 : vector<16x1xf32>
    %116 = vector.broadcast %115 : vector<16x1xf32> to vector<16x32xf32>
    %117 = arith.mulf %107, %116 : vector<16x32xf32>
    %118 = vector.broadcast %99 : vector<1x32xf32> to vector<16x32xf32>
    %119 = arith.mulf %117, %118 : vector<16x32xf32>
    %120 = vector.broadcast %101 : vector<1x32xf32> to vector<16x32xf32>
    %121 = arith.addf %119, %120 : vector<16x32xf32>
    %c0_49 = arith.constant 0 : index
    %c0_50 = arith.constant 0 : index
    %c0_51 = arith.constant 0 : index
    %122 = vector.load %arg10[%c0_49, %c0_50, %c0_51] : memref<2x32x64xf32, #tpu.memory_space<vmem>>, vector<1x32x64xf32>
    %123 = vector.shape_cast %122 : vector<1x32x64xf32> to vector<32x64xf32>
    %cst_52 = arith.constant dense<0.000000e+00> : vector<16x64xf32>
    %124 = tpu.matmul %121, %123, %cst_52 {dimension_numbers = #tpu.dot_dimension_numbers<[1], [0], [0], [1], [0, 0, 1, 1], [], []>} : vector<16x32xf32>, vector<32x64xf32>, vector<16x64xf32> -> vector<16x64xf32>
    %c0_53 = arith.constant 0 : index
    %c0_54 = arith.constant 0 : index
    %c0_55 = arith.constant 0 : index
    %125 = vector.load %arg11[%c0_53, %c0_54, %c0_55] : memref<2x1x64xf32, #tpu.memory_space<vmem>>, vector<1x1x64xf32>
    %126 = vector.shape_cast %125 : vector<1x1x64xf32> to vector<1x64xf32>
    %127 = vector.broadcast %126 : vector<1x64xf32> to vector<16x64xf32>
    %128 = arith.addf %124, %127 : vector<16x64xf32>
    %cst_56 = arith.constant 0.000000e+00 : f32
    %129 = vector.broadcast %cst_56 : f32 to vector<16x64xf32>
    %130 = arith.maximumf %128, %129 : vector<16x64xf32>
    %c0_57 = arith.constant 0 : index
    %c0_58 = arith.constant 0 : index
    %c0_59 = arith.constant 0 : index
    %131 = vector.load %arg12[%c0_57, %c0_58, %c0_59] : memref<2x64x32xf32, #tpu.memory_space<vmem>>, vector<1x64x32xf32>
    %132 = vector.shape_cast %131 : vector<1x64x32xf32> to vector<64x32xf32>
    %cst_60 = arith.constant dense<0.000000e+00> : vector<16x32xf32>
    %133 = tpu.matmul %130, %132, %cst_60 {dimension_numbers = #tpu.dot_dimension_numbers<[1], [0], [0], [1], [0, 0, 1, 1], [], []>} : vector<16x64xf32>, vector<64x32xf32>, vector<16x32xf32> -> vector<16x32xf32>
    %c0_61 = arith.constant 0 : index
    %c0_62 = arith.constant 0 : index
    %c0_63 = arith.constant 0 : index
    %134 = vector.load %arg13[%c0_61, %c0_62, %c0_63] : memref<2x1x32xf32, #tpu.memory_space<vmem>>, vector<1x1x32xf32>
    %135 = vector.shape_cast %134 : vector<1x1x32xf32> to vector<1x32xf32>
    %136 = vector.broadcast %135 : vector<1x32xf32> to vector<16x32xf32>
    %137 = arith.addf %133, %136 : vector<16x32xf32>
    %138 = arith.addf %121, %137 : vector<16x32xf32>
    %c0_64 = arith.constant 0 : index
    %c0_65 = arith.constant 0 : index
    %c0_66 = arith.constant 0 : index
    %139 = vector.load %arg14[%c0_64, %c0_65, %c0_66] : memref<2x1x32xf32, #tpu.memory_space<vmem>>, vector<1x1x32xf32>
    %140 = vector.shape_cast %139 : vector<1x1x32xf32> to vector<1x32xf32>
    %c0_67 = arith.constant 0 : index
    %c0_68 = arith.constant 0 : index
    %c0_69 = arith.constant 0 : index
    %141 = vector.load %arg15[%c0_67, %c0_68, %c0_69] : memref<2x1x32xf32, #tpu.memory_space<vmem>>, vector<1x1x32xf32>
    %142 = vector.shape_cast %141 : vector<1x1x32xf32> to vector<1x32xf32>
    %cst_70 = arith.constant dense<0.000000e+00> : vector<16xf32>
    %143 = vector.multi_reduction <add>, %138, %cst_70 [1] : vector<16x32xf32> to vector<16xf32>
    %144 = vector.shape_cast %143 : vector<16xf32> to vector<16x1xf32>
    %cst_71 = arith.constant 3.200000e+01 : f32
    %145 = vector.broadcast %cst_71 : f32 to vector<16x1xf32>
    %146 = arith.divf %144, %145 : vector<16x1xf32>
    %147 = vector.broadcast %146 : vector<16x1xf32> to vector<16x32xf32>
    %148 = arith.subf %138, %147 : vector<16x32xf32>
    %149 = arith.mulf %148, %148 : vector<16x32xf32>
    %cst_72 = arith.constant dense<0.000000e+00> : vector<16xf32>
    %150 = vector.multi_reduction <add>, %149, %cst_72 [1] : vector<16x32xf32> to vector<16xf32>
    %151 = vector.shape_cast %150 : vector<16xf32> to vector<16x1xf32>
    %cst_73 = arith.constant 3.200000e+01 : f32
    %152 = vector.broadcast %cst_73 : f32 to vector<16x1xf32>
    %153 = arith.divf %151, %152 : vector<16x1xf32>
    %cst_74 = arith.constant 9.99999974E-6 : f32
    %154 = vector.broadcast %cst_74 : f32 to vector<16x1xf32>
    %155 = arith.addf %153, %154 : vector<16x1xf32>
    %156 = math.rsqrt %155 : vector<16x1xf32>
    %157 = vector.broadcast %156 : vector<16x1xf32> to vector<16x32xf32>
    %158 = arith.mulf %148, %157 : vector<16x32xf32>
    %159 = vector.broadcast %140 : vector<1x32xf32> to vector<16x32xf32>
    %160 = arith.mulf %158, %159 : vector<16x32xf32>
    %161 = vector.broadcast %142 : vector<1x32xf32> to vector<16x32xf32>
    %162 = arith.addf %160, %161 : vector<16x32xf32>
    %c1 = arith.constant 1 : index
    %c0_75 = arith.constant 0 : index
    %c0_76 = arith.constant 0 : index
    %163 = vector.load %arg4[%c1, %c0_75, %c0_76] : memref<2x32x96xf32, #tpu.memory_space<vmem>>, vector<1x32x96xf32>
    %164 = vector.shape_cast %163 : vector<1x32x96xf32> to vector<32x96xf32>
    %cst_77 = arith.constant dense<0.000000e+00> : vector<16x96xf32>
    %165 = tpu.matmul %162, %164, %cst_77 {dimension_numbers = #tpu.dot_dimension_numbers<[1], [0], [0], [1], [0, 0, 1, 1], [], []>} : vector<16x32xf32>, vector<32x96xf32>, vector<16x96xf32> -> vector<16x96xf32>
    %c1_78 = arith.constant 1 : index
    %c0_79 = arith.constant 0 : index
    %c0_80 = arith.constant 0 : index
    %166 = vector.load %arg5[%c1_78, %c0_79, %c0_80] : memref<2x1x96xf32, #tpu.memory_space<vmem>>, vector<1x1x96xf32>
    %167 = vector.shape_cast %166 : vector<1x1x96xf32> to vector<1x96xf32>
    %168 = vector.broadcast %167 : vector<1x96xf32> to vector<16x96xf32>
    %169 = arith.addf %165, %168 : vector<16x96xf32>
    %170 = vector.extract_strided_slice %169 {offsets = [0, 0], sizes = [16, 32], strides = [1, 1]} : vector<16x96xf32> to vector<16x32xf32>
    %171 = vector.extract_strided_slice %169 {offsets = [0, 32], sizes = [16, 32], strides = [1, 1]} : vector<16x96xf32> to vector<16x32xf32>
    %172 = vector.extract_strided_slice %169 {offsets = [0, 64], sizes = [16, 32], strides = [1, 1]} : vector<16x96xf32> to vector<16x32xf32>
    %c1_81 = arith.constant 1 : index
    %c0_82 = arith.constant 0 : index
    %c0_83 = arith.constant 0 : index
    %173 = vector.load %arg6[%c1_81, %c0_82, %c0_83] : memref<2x32x32xf32, #tpu.memory_space<vmem>>, vector<1x32x32xf32>
    %174 = vector.shape_cast %173 : vector<1x32x32xf32> to vector<32x32xf32>
    %cst_84 = arith.constant 0.000000e+00 : f32
    %175 = vector.broadcast %cst_84 : f32 to vector<16x32xf32>
    %176 = vector.extract_strided_slice %170 {offsets = [0, 0], sizes = [16, 8], strides = [1, 1]} : vector<16x32xf32> to vector<16x8xf32>
    %177 = vector.extract_strided_slice %171 {offsets = [0, 0], sizes = [16, 8], strides = [1, 1]} : vector<16x32xf32> to vector<16x8xf32>
    %178 = vector.extract_strided_slice %172 {offsets = [0, 0], sizes = [16, 8], strides = [1, 1]} : vector<16x32xf32> to vector<16x8xf32>
    %cst_85 = arith.constant dense<0.000000e+00> : vector<16x16xf32>
    %179 = tpu.matmul %176, %177, %cst_85 {dimension_numbers = #tpu.dot_dimension_numbers<[1], [1], [0], [0], [0, 0, 1, 0], [], []>} : vector<16x8xf32>, vector<16x8xf32>, vector<16x16xf32> -> vector<16x16xf32>
    %180 = arith.addf %179, %3 : vector<16x16xf32>
    %cst_86 = arith.constant dense<0xFF800000> : vector<16xf32>
    %181 = vector.multi_reduction <maximumf>, %180, %cst_86 [1] : vector<16x16xf32> to vector<16xf32>
    %182 = vector.shape_cast %181 : vector<16xf32> to vector<16x1xf32>
    %183 = vector.broadcast %182 : vector<16x1xf32> to vector<16x16xf32>
    %184 = arith.subf %180, %183 : vector<16x16xf32>
    %185 = math.exp %184 : vector<16x16xf32>
    %cst_87 = arith.constant dense<0.000000e+00> : vector<16xf32>
    %186 = vector.multi_reduction <add>, %185, %cst_87 [1] : vector<16x16xf32> to vector<16xf32>
    %187 = vector.shape_cast %186 : vector<16xf32> to vector<16x1xf32>
    %188 = tpu.reciprocal %187 {approx = true} : vector<16x1xf32> -> vector<16x1xf32>
    %189 = vector.broadcast %188 : vector<16x1xf32> to vector<16x16xf32>
    %190 = arith.mulf %185, %189 : vector<16x16xf32>
    %cst_88 = arith.constant dense<0.000000e+00> : vector<16x8xf32>
    %191 = tpu.matmul %190, %178, %cst_88 {dimension_numbers = #tpu.dot_dimension_numbers<[1], [0], [0], [1], [0, 0, 1, 1], [], []>} : vector<16x16xf32>, vector<16x8xf32>, vector<16x8xf32> -> vector<16x8xf32>
    %192 = vector.extract_strided_slice %174 {offsets = [0, 0], sizes = [8, 32], strides = [1, 1]} : vector<32x32xf32> to vector<8x32xf32>
    %cst_89 = arith.constant dense<0.000000e+00> : vector<16x32xf32>
    %193 = tpu.matmul %191, %192, %cst_89 {dimension_numbers = #tpu.dot_dimension_numbers<[1], [0], [0], [1], [0, 0, 1, 1], [], []>} : vector<16x8xf32>, vector<8x32xf32>, vector<16x32xf32> -> vector<16x32xf32>
    %194 = arith.addf %175, %193 : vector<16x32xf32>
    %195 = vector.extract_strided_slice %170 {offsets = [0, 8], sizes = [16, 8], strides = [1, 1]} : vector<16x32xf32> to vector<16x8xf32>
    %196 = vector.extract_strided_slice %171 {offsets = [0, 8], sizes = [16, 8], strides = [1, 1]} : vector<16x32xf32> to vector<16x8xf32>
    %197 = vector.extract_strided_slice %172 {offsets = [0, 8], sizes = [16, 8], strides = [1, 1]} : vector<16x32xf32> to vector<16x8xf32>
    %cst_90 = arith.constant dense<0.000000e+00> : vector<16x16xf32>
    %198 = tpu.matmul %195, %196, %cst_90 {dimension_numbers = #tpu.dot_dimension_numbers<[1], [1], [0], [0], [0, 0, 1, 0], [], []>} : vector<16x8xf32>, vector<16x8xf32>, vector<16x16xf32> -> vector<16x16xf32>
    %199 = arith.addf %198, %3 : vector<16x16xf32>
    %cst_91 = arith.constant dense<0xFF800000> : vector<16xf32>
    %200 = vector.multi_reduction <maximumf>, %199, %cst_91 [1] : vector<16x16xf32> to vector<16xf32>
    %201 = vector.shape_cast %200 : vector<16xf32> to vector<16x1xf32>
    %202 = vector.broadcast %201 : vector<16x1xf32> to vector<16x16xf32>
    %203 = arith.subf %199, %202 : vector<16x16xf32>
    %204 = math.exp %203 : vector<16x16xf32>
    %cst_92 = arith.constant dense<0.000000e+00> : vector<16xf32>
    %205 = vector.multi_reduction <add>, %204, %cst_92 [1] : vector<16x16xf32> to vector<16xf32>
    %206 = vector.shape_cast %205 : vector<16xf32> to vector<16x1xf32>
    %207 = tpu.reciprocal %206 {approx = true} : vector<16x1xf32> -> vector<16x1xf32>
    %208 = vector.broadcast %207 : vector<16x1xf32> to vector<16x16xf32>
    %209 = arith.mulf %204, %208 : vector<16x16xf32>
    %cst_93 = arith.constant dense<0.000000e+00> : vector<16x8xf32>
    %210 = tpu.matmul %209, %197, %cst_93 {dimension_numbers = #tpu.dot_dimension_numbers<[1], [0], [0], [1], [0, 0, 1, 1], [], []>} : vector<16x16xf32>, vector<16x8xf32>, vector<16x8xf32> -> vector<16x8xf32>
    %211 = vector.extract_strided_slice %174 {offsets = [8, 0], sizes = [8, 32], strides = [1, 1]} : vector<32x32xf32> to vector<8x32xf32>
    %cst_94 = arith.constant dense<0.000000e+00> : vector<16x32xf32>
    %212 = tpu.matmul %210, %211, %cst_94 {dimension_numbers = #tpu.dot_dimension_numbers<[1], [0], [0], [1], [0, 0, 1, 1], [], []>} : vector<16x8xf32>, vector<8x32xf32>, vector<16x32xf32> -> vector<16x32xf32>
    %213 = arith.addf %194, %212 : vector<16x32xf32>
    %214 = vector.extract_strided_slice %170 {offsets = [0, 16], sizes = [16, 8], strides = [1, 1]} : vector<16x32xf32> to vector<16x8xf32>
    %215 = vector.extract_strided_slice %171 {offsets = [0, 16], sizes = [16, 8], strides = [1, 1]} : vector<16x32xf32> to vector<16x8xf32>
    %216 = vector.extract_strided_slice %172 {offsets = [0, 16], sizes = [16, 8], strides = [1, 1]} : vector<16x32xf32> to vector<16x8xf32>
    %cst_95 = arith.constant dense<0.000000e+00> : vector<16x16xf32>
    %217 = tpu.matmul %214, %215, %cst_95 {dimension_numbers = #tpu.dot_dimension_numbers<[1], [1], [0], [0], [0, 0, 1, 0], [], []>} : vector<16x8xf32>, vector<16x8xf32>, vector<16x16xf32> -> vector<16x16xf32>
    %218 = arith.addf %217, %3 : vector<16x16xf32>
    %cst_96 = arith.constant dense<0xFF800000> : vector<16xf32>
    %219 = vector.multi_reduction <maximumf>, %218, %cst_96 [1] : vector<16x16xf32> to vector<16xf32>
    %220 = vector.shape_cast %219 : vector<16xf32> to vector<16x1xf32>
    %221 = vector.broadcast %220 : vector<16x1xf32> to vector<16x16xf32>
    %222 = arith.subf %218, %221 : vector<16x16xf32>
    %223 = math.exp %222 : vector<16x16xf32>
    %cst_97 = arith.constant dense<0.000000e+00> : vector<16xf32>
    %224 = vector.multi_reduction <add>, %223, %cst_97 [1] : vector<16x16xf32> to vector<16xf32>
    %225 = vector.shape_cast %224 : vector<16xf32> to vector<16x1xf32>
    %226 = tpu.reciprocal %225 {approx = true} : vector<16x1xf32> -> vector<16x1xf32>
    %227 = vector.broadcast %226 : vector<16x1xf32> to vector<16x16xf32>
    %228 = arith.mulf %223, %227 : vector<16x16xf32>
    %cst_98 = arith.constant dense<0.000000e+00> : vector<16x8xf32>
    %229 = tpu.matmul %228, %216, %cst_98 {dimension_numbers = #tpu.dot_dimension_numbers<[1], [0], [0], [1], [0, 0, 1, 1], [], []>} : vector<16x16xf32>, vector<16x8xf32>, vector<16x8xf32> -> vector<16x8xf32>
    %230 = vector.extract_strided_slice %174 {offsets = [16, 0], sizes = [8, 32], strides = [1, 1]} : vector<32x32xf32> to vector<8x32xf32>
    %cst_99 = arith.constant dense<0.000000e+00> : vector<16x32xf32>
    %231 = tpu.matmul %229, %230, %cst_99 {dimension_numbers = #tpu.dot_dimension_numbers<[1], [0], [0], [1], [0, 0, 1, 1], [], []>} : vector<16x8xf32>, vector<8x32xf32>, vector<16x32xf32> -> vector<16x32xf32>
    %232 = arith.addf %213, %231 : vector<16x32xf32>
    %233 = vector.extract_strided_slice %170 {offsets = [0, 24], sizes = [16, 8], strides = [1, 1]} : vector<16x32xf32> to vector<16x8xf32>
    %234 = vector.extract_strided_slice %171 {offsets = [0, 24], sizes = [16, 8], strides = [1, 1]} : vector<16x32xf32> to vector<16x8xf32>
    %235 = vector.extract_strided_slice %172 {offsets = [0, 24], sizes = [16, 8], strides = [1, 1]} : vector<16x32xf32> to vector<16x8xf32>
    %cst_100 = arith.constant dense<0.000000e+00> : vector<16x16xf32>
    %236 = tpu.matmul %233, %234, %cst_100 {dimension_numbers = #tpu.dot_dimension_numbers<[1], [1], [0], [0], [0, 0, 1, 0], [], []>} : vector<16x8xf32>, vector<16x8xf32>, vector<16x16xf32> -> vector<16x16xf32>
    %237 = arith.addf %236, %3 : vector<16x16xf32>
    %cst_101 = arith.constant dense<0xFF800000> : vector<16xf32>
    %238 = vector.multi_reduction <maximumf>, %237, %cst_101 [1] : vector<16x16xf32> to vector<16xf32>
    %239 = vector.shape_cast %238 : vector<16xf32> to vector<16x1xf32>
    %240 = vector.broadcast %239 : vector<16x1xf32> to vector<16x16xf32>
    %241 = arith.subf %237, %240 : vector<16x16xf32>
    %242 = math.exp %241 : vector<16x16xf32>
    %cst_102 = arith.constant dense<0.000000e+00> : vector<16xf32>
    %243 = vector.multi_reduction <add>, %242, %cst_102 [1] : vector<16x16xf32> to vector<16xf32>
    %244 = vector.shape_cast %243 : vector<16xf32> to vector<16x1xf32>
    %245 = tpu.reciprocal %244 {approx = true} : vector<16x1xf32> -> vector<16x1xf32>
    %246 = vector.broadcast %245 : vector<16x1xf32> to vector<16x16xf32>
    %247 = arith.mulf %242, %246 : vector<16x16xf32>
    %cst_103 = arith.constant dense<0.000000e+00> : vector<16x8xf32>
    %248 = tpu.matmul %247, %235, %cst_103 {dimension_numbers = #tpu.dot_dimension_numbers<[1], [0], [0], [1], [0, 0, 1, 1], [], []>} : vector<16x16xf32>, vector<16x8xf32>, vector<16x8xf32> -> vector<16x8xf32>
    %249 = vector.extract_strided_slice %174 {offsets = [24, 0], sizes = [8, 32], strides = [1, 1]} : vector<32x32xf32> to vector<8x32xf32>
    %cst_104 = arith.constant dense<0.000000e+00> : vector<16x32xf32>
    %250 = tpu.matmul %248, %249, %cst_104 {dimension_numbers = #tpu.dot_dimension_numbers<[1], [0], [0], [1], [0, 0, 1, 1], [], []>} : vector<16x8xf32>, vector<8x32xf32>, vector<16x32xf32> -> vector<16x32xf32>
    %251 = arith.addf %232, %250 : vector<16x32xf32>
    %c1_105 = arith.constant 1 : index
    %c0_106 = arith.constant 0 : index
    %c0_107 = arith.constant 0 : index
    %252 = vector.load %arg7[%c1_105, %c0_106, %c0_107] : memref<2x1x32xf32, #tpu.memory_space<vmem>>, vector<1x1x32xf32>
    %253 = vector.shape_cast %252 : vector<1x1x32xf32> to vector<1x32xf32>
    %254 = vector.broadcast %253 : vector<1x32xf32> to vector<16x32xf32>
    %255 = arith.addf %251, %254 : vector<16x32xf32>
    %256 = arith.addf %162, %255 : vector<16x32xf32>
    %c1_108 = arith.constant 1 : index
    %c0_109 = arith.constant 0 : index
    %c0_110 = arith.constant 0 : index
    %257 = vector.load %arg8[%c1_108, %c0_109, %c0_110] : memref<2x1x32xf32, #tpu.memory_space<vmem>>, vector<1x1x32xf32>
    %258 = vector.shape_cast %257 : vector<1x1x32xf32> to vector<1x32xf32>
    %c1_111 = arith.constant 1 : index
    %c0_112 = arith.constant 0 : index
    %c0_113 = arith.constant 0 : index
    %259 = vector.load %arg9[%c1_111, %c0_112, %c0_113] : memref<2x1x32xf32, #tpu.memory_space<vmem>>, vector<1x1x32xf32>
    %260 = vector.shape_cast %259 : vector<1x1x32xf32> to vector<1x32xf32>
    %cst_114 = arith.constant dense<0.000000e+00> : vector<16xf32>
    %261 = vector.multi_reduction <add>, %256, %cst_114 [1] : vector<16x32xf32> to vector<16xf32>
    %262 = vector.shape_cast %261 : vector<16xf32> to vector<16x1xf32>
    %cst_115 = arith.constant 3.200000e+01 : f32
    %263 = vector.broadcast %cst_115 : f32 to vector<16x1xf32>
    %264 = arith.divf %262, %263 : vector<16x1xf32>
    %265 = vector.broadcast %264 : vector<16x1xf32> to vector<16x32xf32>
    %266 = arith.subf %256, %265 : vector<16x32xf32>
    %267 = arith.mulf %266, %266 : vector<16x32xf32>
    %cst_116 = arith.constant dense<0.000000e+00> : vector<16xf32>
    %268 = vector.multi_reduction <add>, %267, %cst_116 [1] : vector<16x32xf32> to vector<16xf32>
    %269 = vector.shape_cast %268 : vector<16xf32> to vector<16x1xf32>
    %cst_117 = arith.constant 3.200000e+01 : f32
    %270 = vector.broadcast %cst_117 : f32 to vector<16x1xf32>
    %271 = arith.divf %269, %270 : vector<16x1xf32>
    %cst_118 = arith.constant 9.99999974E-6 : f32
    %272 = vector.broadcast %cst_118 : f32 to vector<16x1xf32>
    %273 = arith.addf %271, %272 : vector<16x1xf32>
    %274 = math.rsqrt %273 : vector<16x1xf32>
    %275 = vector.broadcast %274 : vector<16x1xf32> to vector<16x32xf32>
    %276 = arith.mulf %266, %275 : vector<16x32xf32>
    %277 = vector.broadcast %258 : vector<1x32xf32> to vector<16x32xf32>
    %278 = arith.mulf %276, %277 : vector<16x32xf32>
    %279 = vector.broadcast %260 : vector<1x32xf32> to vector<16x32xf32>
    %280 = arith.addf %278, %279 : vector<16x32xf32>
    %c1_119 = arith.constant 1 : index
    %c0_120 = arith.constant 0 : index
    %c0_121 = arith.constant 0 : index
    %281 = vector.load %arg10[%c1_119, %c0_120, %c0_121] : memref<2x32x64xf32, #tpu.memory_space<vmem>>, vector<1x32x64xf32>
    %282 = vector.shape_cast %281 : vector<1x32x64xf32> to vector<32x64xf32>
    %cst_122 = arith.constant dense<0.000000e+00> : vector<16x64xf32>
    %283 = tpu.matmul %280, %282, %cst_122 {dimension_numbers = #tpu.dot_dimension_numbers<[1], [0], [0], [1], [0, 0, 1, 1], [], []>} : vector<16x32xf32>, vector<32x64xf32>, vector<16x64xf32> -> vector<16x64xf32>
    %c1_123 = arith.constant 1 : index
    %c0_124 = arith.constant 0 : index
    %c0_125 = arith.constant 0 : index
    %284 = vector.load %arg11[%c1_123, %c0_124, %c0_125] : memref<2x1x64xf32, #tpu.memory_space<vmem>>, vector<1x1x64xf32>
    %285 = vector.shape_cast %284 : vector<1x1x64xf32> to vector<1x64xf32>
    %286 = vector.broadcast %285 : vector<1x64xf32> to vector<16x64xf32>
    %287 = arith.addf %283, %286 : vector<16x64xf32>
    %cst_126 = arith.constant 0.000000e+00 : f32
    %288 = vector.broadcast %cst_126 : f32 to vector<16x64xf32>
    %289 = arith.maximumf %287, %288 : vector<16x64xf32>
    %c1_127 = arith.constant 1 : index
    %c0_128 = arith.constant 0 : index
    %c0_129 = arith.constant 0 : index
    %290 = vector.load %arg12[%c1_127, %c0_128, %c0_129] : memref<2x64x32xf32, #tpu.memory_space<vmem>>, vector<1x64x32xf32>
    %291 = vector.shape_cast %290 : vector<1x64x32xf32> to vector<64x32xf32>
    %cst_130 = arith.constant dense<0.000000e+00> : vector<16x32xf32>
    %292 = tpu.matmul %289, %291, %cst_130 {dimension_numbers = #tpu.dot_dimension_numbers<[1], [0], [0], [1], [0, 0, 1, 1], [], []>} : vector<16x64xf32>, vector<64x32xf32>, vector<16x32xf32> -> vector<16x32xf32>
    %c1_131 = arith.constant 1 : index
    %c0_132 = arith.constant 0 : index
    %c0_133 = arith.constant 0 : index
    %293 = vector.load %arg13[%c1_131, %c0_132, %c0_133] : memref<2x1x32xf32, #tpu.memory_space<vmem>>, vector<1x1x32xf32>
    %294 = vector.shape_cast %293 : vector<1x1x32xf32> to vector<1x32xf32>
    %295 = vector.broadcast %294 : vector<1x32xf32> to vector<16x32xf32>
    %296 = arith.addf %292, %295 : vector<16x32xf32>
    %297 = arith.addf %280, %296 : vector<16x32xf32>
    %c1_134 = arith.constant 1 : index
    %c0_135 = arith.constant 0 : index
    %c0_136 = arith.constant 0 : index
    %298 = vector.load %arg14[%c1_134, %c0_135, %c0_136] : memref<2x1x32xf32, #tpu.memory_space<vmem>>, vector<1x1x32xf32>
    %299 = vector.shape_cast %298 : vector<1x1x32xf32> to vector<1x32xf32>
    %c1_137 = arith.constant 1 : index
    %c0_138 = arith.constant 0 : index
    %c0_139 = arith.constant 0 : index
    %300 = vector.load %arg15[%c1_137, %c0_138, %c0_139] : memref<2x1x32xf32, #tpu.memory_space<vmem>>, vector<1x1x32xf32>
    %301 = vector.shape_cast %300 : vector<1x1x32xf32> to vector<1x32xf32>
    %cst_140 = arith.constant dense<0.000000e+00> : vector<16xf32>
    %302 = vector.multi_reduction <add>, %297, %cst_140 [1] : vector<16x32xf32> to vector<16xf32>
    %303 = vector.shape_cast %302 : vector<16xf32> to vector<16x1xf32>
    %cst_141 = arith.constant 3.200000e+01 : f32
    %304 = vector.broadcast %cst_141 : f32 to vector<16x1xf32>
    %305 = arith.divf %303, %304 : vector<16x1xf32>
    %306 = vector.broadcast %305 : vector<16x1xf32> to vector<16x32xf32>
    %307 = arith.subf %297, %306 : vector<16x32xf32>
    %308 = arith.mulf %307, %307 : vector<16x32xf32>
    %cst_142 = arith.constant dense<0.000000e+00> : vector<16xf32>
    %309 = vector.multi_reduction <add>, %308, %cst_142 [1] : vector<16x32xf32> to vector<16xf32>
    %310 = vector.shape_cast %309 : vector<16xf32> to vector<16x1xf32>
    %cst_143 = arith.constant 3.200000e+01 : f32
    %311 = vector.broadcast %cst_143 : f32 to vector<16x1xf32>
    %312 = arith.divf %310, %311 : vector<16x1xf32>
    %cst_144 = arith.constant 9.99999974E-6 : f32
    %313 = vector.broadcast %cst_144 : f32 to vector<16x1xf32>
    %314 = arith.addf %312, %313 : vector<16x1xf32>
    %315 = math.rsqrt %314 : vector<16x1xf32>
    %316 = vector.broadcast %315 : vector<16x1xf32> to vector<16x32xf32>
    %317 = arith.mulf %307, %316 : vector<16x32xf32>
    %318 = vector.broadcast %299 : vector<1x32xf32> to vector<16x32xf32>
    %319 = arith.mulf %317, %318 : vector<16x32xf32>
    %320 = vector.broadcast %301 : vector<1x32xf32> to vector<16x32xf32>
    %321 = arith.addf %319, %320 : vector<16x32xf32>
    %c0_145 = arith.constant 0 : index
    %c0_146 = arith.constant 0 : index
    %322 = vector.load %arg3[%c0_145, %c0_146] : memref<2x16xf32, #tpu.memory_space<vmem>>, vector<2x16xf32>
    %cst_147 = arith.constant dense<0.000000e+00> : vector<2x32xf32>
    %323 = tpu.matmul %322, %321, %cst_147 {dimension_numbers = #tpu.dot_dimension_numbers<[1], [0], [0], [1], [0, 0, 1, 1], [], []>} : vector<2x16xf32>, vector<16x32xf32>, vector<2x32xf32> -> vector<2x32xf32>
    %c0_148 = arith.constant 0 : index
    %c0_149 = arith.constant 0 : index
    %324 = vector.load %arg16[%c0_148, %c0_149] : memref<2x32xf32, #tpu.memory_space<vmem>>, vector<2x32xf32>
    tpu.vector_store %arg16[%c0_148, %c0_149], %323 {strides = array<i32>} : memref<2x32xf32, #tpu.memory_space<vmem>>, vector<2x32xf32>,
    return
  }
}

</mosaic_0001>

<bundles_post_ra>
// kernel: encode_video_segment.1
= control target key start
LH: loop header
LB: loop body
LE: loop exit
PB: predicated region body
PF: predicated region fallthrough
CT: control target
= control target key end

     0   :  { %s4620_s0 = inlined_call_operand.vmem [shape: f32[16,32], index: 0, kind: input, shape index: {}]   ;;  %s4621_s1 = inlined_call_operand.vmem [shape: f32[16,32], index: 1, kind: input, shape index: {}]   ;;  %s4622_s2 = inlined_call_operand.vmem [shape: f32[16,16], index: 2, kind: input, shape index: {}]   ;;  %s4623_s3 = inlined_call_operand.vmem [shape: f32[2,16], index: 3, kind: input, shape index: {}]   ;;  %s4624_s4 = inlined_call_operand.vmem [shape: f32[2,32,96], index: 4, kind: input, shape index: {}]   ;;  %s4625_s5 = inlined_call_operand.vmem [shape: f32[2,1,96], index: 5, kind: input, shape index: {}]   ;;  %s4626_s6 = inlined_call_operand.vmem [shape: f32[2,32,32], index: 6, kind: input, shape index: {}]   ;;  %s4627_s7 = inlined_call_operand.vmem [shape: f32[2,1,32], index: 7, kind: input, shape index: {}]   ;;  %s4628_s8 = inlined_call_operand.vmem [shape: f32[2,1,32], index: 8, kind: input, shape index: {}]   ;;  %s4629_s9 = inlined_call_operand.vmem [shape: f32[2,1,32], index: 9, kind: input, shape index: {}]   ;;  %s4630_s10 = inlined_call_operand.vmem [shape: f32[2,32,64], index: 10, kind: input, shape index: {}]   ;;  %s4631_s11 = inlined_call_operand.vmem [shape: f32[2,1,64], index: 11, kind: input, shape index: {}]   ;;  %s4632_s12 = inlined_call_operand.vmem [shape: f32[2,64,32], index: 12, kind: input, shape index: {}]   ;;  %s4633_s13 = inlined_call_operand.vmem [shape: f32[2,1,32], index: 13, kind: input, shape index: {}]   ;;  %s4634_s14 = inlined_call_operand.vmem [shape: f32[2,1,32], index: 14, kind: input, shape index: {}]   ;;  %s4635_s15 = inlined_call_operand.vmem [shape: f32[2,1,32], index: 15, kind: input, shape index: {}]   ;;  %s4636_s16 = inlined_call_operand.hbm [shape: f32[2,32], index: 16, kind: output, shape index: {}]  }
   0x1   :  { %4644 = sst [smem:[#allocation5_spill]] %s4620_s0 }
   0x2   :  { %v62_v0 = vld [vmem:[%s4624_s4] sm:$0xff]  ;;  %v63_v1 = vld [vmem:[%s4624_s4 + $0x8] sm:$0xff]  ;;  %v64_v2 = vld [vmem:[%s4624_s4 + $0x10] sm:$0xff]  ;;  %s4645_s0 = sld [smem:[#allocation5_spill]]  ;;  %vm73_vm0 = vcmask 261120  }
   0x3   :  { %v3692_v3 = vpack.c.bf16 %v63_v1, %v62_v0  ;;  %v65_v4 = vld [vmem:[%s4624_s4 + $0x18] sm:$0xff]  ;;  %v56_v6 = vld [vmem:[%s4621_s1] sm:$0xff] }
   0x4   :  { %v3696_v7 = vpack.c.bf16 %v65_v4, %v64_v2 }
   0x8   :  { %v54_v5 = vld [vmem:[%s4645_s0] sm:$0xff] }
   0x9   :  { %v4170_v8 = vadd.f32 %v56_v6, %v54_v5 }
   0xa   :  { %21 = vsyncpa [#allocation3], 0  ;;  %3693 = vmatprep.subr.bf16.mxu1 %v3692_v3  ;;  %v55_v9 = vld [vmem:[%s4645_s0 + $0x8] sm:$0xff]  ;;  %v3195_v12 = vld [vmem:[%s4625_s5] ss:$0 sm:$0xff]  ;;  %vm165_vm1 = vcmask 64512  }
   0xb   :  { %3695 = vmatpush3.bf16.msra.mxu1 %v3692_v3  ;;  %3459 = vmatprep.mubr.msk.f32.mxu1 %vm73_vm0, %v4170_v8  ;;  %v57_v10 = vld [vmem:[%s4621_s1 + $0x8] sm:$0xff]  ;;  %s4052_s25 = smov 120   ;;  %s4053_s1 = smov 96   ;;  %vm4213_vm2 = vmpackc.low %vm165_vm1, %vm165_vm1  ;;  %v4243_v36 = vld [vmem:[%s4622_s2] sm:$0xff]  ;;  %vm249_vm3 = vcmask 130048   ;;  %vm1452_vm4 = vcmask 523264  }
   0xc   :  { %3697 = vmatprep.subr.bf16.mxu1 %v3696_v7  ;;  %v4180_v11 = vadd.f32 %v57_v10, %v55_v9  ;;  %s4054_s26 = smov 88   ;;  %s4055_s27 = smov 112   ;;  %v4238_v35 = vld [vmem:[%s4622_s2 + $0x8] sm:$0xff]  ;;  %vm4064_vm5 = vmmov 0   ;;  %vm3179_vm6 = vcmask 254976  }
   0xd   :  { %s4056_s28 = smov 80   ;;  %s4640_s18 = smov 56  }
   0xe   :  { %s4643_s19 = smov 72   ;;  %s4059_s20 = smov 64  }
   0xf   :  { %3699 = vmatpush3.bf16.msra.mxu1 %v3696_v7  ;;  %s4641_s21 = smov 104   ;;  %s4639_s22 = smov 48  }
  0x10   :  { %s4638_s23 = smov 40   ;;  %s4066_s17 = smov [#allocation2]  }
  0x12   :  { %3460 = vmatmul.mubr.msk.f32.vlgmr.msra.gmra.mrb[0].mxu1 %vm73_vm0, %v4180_v11 }
  0xe5   :  { %v3461_v13 = vpop.f32.mrb[0].mxu1 }
  0xe6   :  { %v4187_v14 = vadd.f32 %v3461_v13, %v3195_v12  ;;  %v146_v15 = vpop.f32.mrb[1].mxu1 }
  0xe7   :  { %v4189_v16 = vadd.f32 %v3195_v12, %v146_v15 }
  0xe9   :  { %359 = vrot.lane.b32.xlu1 %v4189_v16, %s4052_s25  ;;  %3466 = vmatprep.mubr.msk.f32.mxu1 %vm165_vm1, %v4189_v16  ;;  %v4197_v17 = vpack.i.bf16 %v4187_v14, %v4189_v16 }
  0xeb   :  { %3867 = vrot.lane.b32.xlu0 %v4197_v17, %s4053_s1 }
  0xed   :  { %361 = vrot.lane.b32.xlu1 %v4187_v14, %s4052_s25 }
  0xef   :  { %3872 = vrot.lane.b32.xlu0 %v4197_v17, %s4054_s26 }
  0xf1   :  { %721 = vrot.lane.b32.xlu1 %v4189_v16, %s4055_s27 }
  0xf3   :  { %3877 = vrot.lane.b32.xlu0 %v4197_v17, %s4056_s28 }
  0xf7   :  { %723 = vrot.lane.b32.xlu0 %v4187_v14, %s4055_s27 }
 0x15b   :  { %v360_v28 = vpop.permute.xlu1 %359 }
 0x15d   :  { %v3868_v18 = vpop.permute.xlu0 %3867 }
 0x15e   :  { %v3870_v19 = vunpack.i.h.bf16 %v3868_v18  ;;  %v3869_v20 = vunpack.i.l.bf16 %v3868_v18 }
 0x15f   :  { %v362_v32 = vpop.permute.xlu1 %361 }
 0x160   :  { %v3700_v22 = vpack.c.bf16 %v3870_v19, %v3869_v20 }
 0x161   :  { %v3873_v23 = vpop.permute.xlu0 %3872 }
 0x162   :  { %v3875_v24 = vunpack.i.h.bf16 %v3873_v23  ;;  %v3874_v25 = vunpack.i.l.bf16 %v3873_v23  ;;  %3702 = vmatprep.subr.msk.bf16.mxu1 %vm4213_vm2, %v3700_v22 }
 0x163   :  { %3705 = vmatpush3.bf16.xpose.msk.msra.mxu1 %vm4213_vm2, %v3700_v22  ;;  %v722_v33 = vpop.permute.xlu1 %721 }
 0x164   :  { %v3710_v26 = vpack.c.bf16 %v3875_v24, %v3874_v25 }
 0x165   :  { %v3878_v27 = vpop.permute.xlu0 %3877 }
 0x166   :  { %v3880_v29 = vunpack.i.h.bf16 %v3878_v27  ;;  %v3879_v30 = vunpack.i.l.bf16 %v3878_v27  ;;  %3712 = vmatprep.subr.msk.bf16.mxu1 %vm4213_vm2, %v3710_v26 }
 0x168   :  { %v3720_v31 = vpack.c.bf16 %v3880_v29, %v3879_v30 }
 0x169   :  { %v724_v34 = vpop.permute.xlu0 %723 }
 0x16a   :  { %3467 = vmatmul.mubr.msk.f32.vlgmr.msra.gmra.mrb[2].mxu1 %vm165_vm1, %v4187_v14 }
 0x16b   :  { %3715 = vmatpush3.bf16.xpose.msk.msra.mxu1 %vm4213_vm2, %v3710_v26  ;;  %3480 = vmatprep.mubr.msk.f32.mxu1 %vm165_vm1, %v360_v28 }
 0x16c   :  { %3722 = vmatprep.subr.msk.bf16.mxu1 %vm4213_vm2, %v3720_v31 }
 0x172   :  { %3481 = vmatmul.mubr.msk.f32.vlgmr.msra.gmra.mrb[4].mxu1 %vm165_vm1, %v362_v32 }
 0x173   :  { %3725 = vmatpush3.bf16.xpose.msk.msra.mxu1 %vm4213_vm2, %v3720_v31  ;;  %3504 = vmatprep.mubr.msk.f32.mxu1 %vm165_vm1, %v722_v33 }
 0x17a   :  { %3505 = vmatmul.mubr.msk.f32.vlgmr.msra.gmra.mrb[6].mxu1 %vm165_vm1, %v724_v34 }
 0x23d   :  { %v3468_v37 = vpop.f32.mrb[2].mxu1 }
 0x23e   :  { %v246_v38 = vadd.f32 %v3468_v37, %v4238_v35  ;;  %v240_v39 = vpop.f32.mrb[3].mxu1 }
 0x23f   :  { %v241_v40 = vadd.f32 %v240_v39, %v4243_v36 }
 0x240   :  { %v253_v41 = vsel %vm249_vm3, %v246_v38, -inf }
 0x241   :  { %254 = vmax.xlane.f32.xlu0 %v253_v41  ;;  %v250_v42 = vsel %vm249_vm3, %v241_v40, -inf }
 0x242   :  { %251 = vmax.xlane.f32.xlu1 %v250_v42 }
 0x245   :  { %v3482_v43 = vpop.f32.mrb[4].mxu1 }
 0x246   :  { %v447_v44 = vadd.f32 %v3482_v43, %v4238_v35  ;;  %v441_v45 = vpop.f32.mrb[5].mxu1 }
 0x247   :  { %v442_v46 = vadd.f32 %v441_v45, %v4243_v36 }
 0x248   :  { %v453_v47 = vsel %vm249_vm3, %v447_v44, -inf }
 0x249   :  { %454 = vmax.xlane.f32.xlu1 %v453_v47  ;;  %v450_v48 = vsel %vm249_vm3, %v442_v46, -inf }
 0x24a   :  { %451 = vmax.xlane.f32.xlu0 %v450_v48 }
 0x24d   :  { %v3506_v49 = vpop.f32.mrb[6].mxu1 }
 0x24e   :  { %v803_v50 = vpop.f32.mrb[7].mxu1  ;;  %v809_v9 = vadd.f32 %v3506_v49, %v4238_v35 }
 0x24f   :  { %v804_v7 = vadd.f32 %v803_v50, %v4243_v36 }
 0x250   :  { %v815_v12 = vsel %vm249_vm3, %v809_v9, -inf }
 0x251   :  { %v812_v10 = vsel %vm249_vm3, %v804_v7, -inf }
 0x2ce   :  { %v255_v51 = vpop.xlane.xlu0 %254 }
 0x2cf   :  { %v257_v52 = vsub.f32 %v246_v38, %v255_v51  ;;  %v252_v53 = vpop.xlane.xlu1 %251 }
 0x2d0   :  { %v256_v54 = vsub.f32 %v241_v40, %v252_v53  ;;  %v155_v53 = vld [vmem:[%s4626_s6] sm:$0xff] }
 0x2d1   :  { %v260_v55 = vmul.f32 1.442695, %v257_v52  ;;  %v156_v52 = vld [vmem:[%s4626_s6 + $0x8] sm:$0xff] }
 0x2d2   :  { %v258_v56 = vmul.f32 1.442695, %v256_v54 }
 0x2d3   :  { %3946 = vpow2.f32 %v260_v55 }
 0x2d4   :  { %3948 = vpow2.f32 %v258_v56 }
 0x2d6   :  { %v455_v57 = vpop.xlane.xlu1 %454 }
 0x2d7   :  { %v457_v58 = vsub.f32 %v447_v44, %v455_v57  ;;  %v452_v59 = vpop.xlane.xlu0 %451 }
 0x2d8   :  { %v456_v60 = vsub.f32 %v442_v46, %v452_v59 }
 0x2d9   :  { %v460_v61 = vmul.f32 1.442695, %v457_v58 }
 0x2da   :  { %v458_v62 = vmul.f32 1.442695, %v456_v60 }
 0x2db   :  { %3950 = vpow2.f32 %v460_v61 }
 0x2dc   :  { %3952 = vpow2.f32 %v458_v62 }
 0x2dd   :  { %v3947_v63 = vpop.eup %3946 }
 0x2de   :  { %v3949_v0 = vpop.eup %3948  ;;  %v265_v1 = vsel %vm249_vm3, %v3947_v63, 0.0 }
 0x2df   :  { %266 = vadd.xlane.f32.xlu1 %v265_v1  ;;  %v262_v2 = vsel %vm249_vm3, %v3949_v0, 0.0 }
 0x2e0   :  { %263 = vadd.xlane.f32.xlu0 %v262_v2 }
 0x2e5   :  { %v4255_v3 = vpop.eup %3950 }
 0x2e6   :  { %v3953_v4 = vpop.eup %3952  ;;  %v465_v5 = vsel %vm249_vm3, %v4255_v3, 0.0 }
 0x2e7   :  { %466 = vadd.xlane.f32.xlu1 %v465_v5  ;;  %v462_v6 = vsel %vm249_vm3, %v3953_v4, 0.0 }
 0x2e8   :  { %463 = vadd.xlane.f32.xlu0 %v462_v6 }
 0x2f8   :  { %3887 = vrot.lane.b32.xlu1 %v4197_v17, %s4640_s18 }
 0x2fc   :  { %3892 = vrot.lane.b32.xlu1 %v4197_v17, %s4643_s19 }
 0x2fe   :  { %3882 = vrot.lane.b32.xlu0 %v4197_v17, %s4059_s20 }
 0x300   :  { %1006 = vrot.lane.b32.xlu1 %v4187_v14, %s4641_s21 }
 0x302   :  { %1004 = vrot.lane.b32.xlu0 %v4189_v16, %s4641_s21 }
 0x321   :  { %813 = vmax.xlane.f32.xlu0 %v812_v10 }
 0x324   :  { %816 = vmax.xlane.f32.xlu1 %v815_v12 }
 0x335   :  { %3897 = vrot.lane.b32.xlu1 %v4197_v17, %s4639_s22 }
 0x339   :  { %3902 = vrot.lane.b32.xlu1 %v4197_v17, %s4638_s23 }
 0x36c   :  { %v267_v14 = vpop.xlane.xlu1 %266 }
 0x36d   :  { %v264_v13 = vpop.xlane.xlu0 %263 }
 0x36e   :  { %3954 = vrcp.f32 %v264_v13 }
 0x36f   :  { %3956 = vrcp.f32 %v267_v14 }
 0x374   :  { %v467_v15 = vpop.xlane.xlu1 %466 }
 0x375   :  { %v464_v16 = vpop.xlane.xlu0 %463 }
 0x376   :  { %3958 = vrcp.f32 %v464_v16 }
 0x377   :  { %3960 = vrcp.f32 %v467_v15 }
 0x378   :  { %v3955_v18 = vpop.eup %3954  ;;  %v3888_v19 = vpop.permute.xlu1 %3887 }
 0x379   :  { %v3883_v20 = vpop.permute.xlu0 %3882  ;;  %v270_v22 = vmul.f32 %v3955_v18, %v3949_v0  ;;  %v3890_v23 = vunpack.i.h.bf16 %v3888_v19  ;;  %v3889_v24 = vunpack.i.l.bf16 %v3888_v19  ;;  %v3957_v28 = vpop.eup %3956 }
 0x37a   :  { %v3885_v25 = vunpack.i.h.bf16 %v3883_v20  ;;  %v3884_v26 = vunpack.i.l.bf16 %v3883_v20  ;;  %v271_v37 = vmul.f32 %v3957_v28, %v3947_v63 }
 0x37b   :  { %3473 = vmatprep.mubr.msk.f32.mxu0 %vm249_vm3, %v270_v22  ;;  %v3716_v32 = vpack.c.bf16 %v3890_v23, %v3889_v24 }
 0x37c   :  { %v3893_v27 = vpop.permute.xlu1 %3892  ;;  %v3706_v17 = vpack.c.bf16 %v3885_v25, %v3884_v26 }
 0x37d   :  { %v3895_v29 = vunpack.i.h.bf16 %v3893_v27  ;;  %v3894_v30 = vunpack.i.l.bf16 %v3893_v27  ;;  %v1005_v31 = vpop.permute.xlu0 %1004 }
 0x37e   :  { %3707 = vmatprep.subr.bf16.mxu0 %v3706_v17  ;;  %3523 = vmatprep.mubr.msk.f32.mxu1 %vm165_vm1, %v1005_v31 }
 0x37f   :  { %v3730_v33 = vpack.c.bf16 %v3895_v29, %v3894_v30  ;;  %3709 = vmatpush3.bf16.msra.mxu0 %v3706_v17  ;;  %v158_v30 = vld [vmem:[%s4626_s6 + $0x18] sm:$0xff] }
 0x380   :  { %v3959_v34 = vpop.eup %3958  ;;  %3717 = vmatprep.subr.bf16.mxu0 %v3716_v32  ;;  %v1007_v41 = vpop.permute.xlu1 %1006 }
 0x381   :  { %v3961_v38 = vpop.eup %3960  ;;  %3732 = vmatprep.subr.msk.bf16.mxu1 %vm4213_vm2, %v3730_v33  ;;  %v470_v39 = vmul.f32 %v3959_v34, %v3953_v4 }
 0x382   :  { %3474 = vmatmul.mubr.msk.f32.vlgmr.msra.gmra.mrb[0].mxu0 %vm249_vm3, %v271_v37  ;;  %3735 = vmatpush3.bf16.xpose.msk.msra.mxu1 %vm4213_vm2, %v3730_v33  ;;  %v471_v40 = vmul.f32 %v3961_v38, %v4255_v3 }
 0x383   :  { %3719 = vmatpush3.bf16.msra.mxu0 %v3716_v32  ;;  %3487 = vmatprep.mubr.msk.f32.mxu0 %vm249_vm3, %v470_v39 }
 0x384   :  { %3490 = vmatprep.subr.mxu0 %v156_v52 }
 0x386   :  { %3488 = vmatmul.mubr.msk.f32.vlgmr.msra.gmra.mrb[2].mxu0 %vm249_vm3, %v471_v40 }
 0x387   :  { %3491 = vmatpush3.msra.mxu0 %v156_v52 }
 0x388   :  { %3495 = vmatprep.subr.mxu0 %v155_v53 }
 0x389   :  { %3524 = vmatmul.mubr.msk.f32.vlgmr.msra.gmra.mrb[8].mxu1 %vm165_vm1, %v1007_v41  ;;  %v3230_v41 = vld [vmem:[%s4627_s7] ss:$0 sm:$0xff] }
 0x3ae   :  { %v814_v42 = vpop.xlane.xlu0 %813 }
 0x3af   :  { %v818_v43 = vsub.f32 %v804_v7, %v814_v42 }
 0x3b1   :  { %v820_v44 = vmul.f32 1.442695, %v818_v43  ;;  %v817_v45 = vpop.xlane.xlu1 %816 }
 0x3b2   :  { %v819_v46 = vsub.f32 %v809_v9, %v817_v45  ;;  %v157_v9 = vld [vmem:[%s4626_s6 + $0x10] sm:$0xff] }
 0x3b3   :  { %3962 = vpow2.f32 %v820_v44 }
 0x3b4   :  { %v822_v47 = vmul.f32 1.442695, %v819_v46 }
 0x3b5   :  { %v3898_v55 = vpop.permute.xlu1 %3897 }
 0x3b6   :  { %3964 = vpow2.f32 %v822_v47  ;;  %v3900_v59 = vunpack.i.h.bf16 %v3898_v55  ;;  %v3899_v60 = vunpack.i.l.bf16 %v3898_v55 }
 0x3b8   :  { %v3726_v63 = vpack.c.bf16 %v3900_v59, %v3899_v60  ;;  %v1344_v59 = vld [vmem:[%s4630_s10 + $0x8] sm:$0xff] }
 0x3b9   :  { %v3903_v6 = vpop.permute.xlu1 %3902 }
 0x3ba   :  { %v3905_v10 = vunpack.i.h.bf16 %v3903_v6  ;;  %v3904_v12 = vunpack.i.l.bf16 %v3903_v6  ;;  %v1441_v6 = vld [vmem:[%s4632_s12 + $0x20] sm:$0xff] }
 0x3bc   :  { %v3736_v16 = vpack.c.bf16 %v3905_v10, %v3904_v12 }
 0x3bd   :  { %v3963_v48 = vpop.eup %3962 }
 0x3be   :  { %v824_v49 = vsel %vm249_vm3, %v3963_v48, 0.0 }
 0x3bf   :  { %825 = vadd.xlane.f32.xlu0 %v824_v49 }
 0x3c0   :  { %v3965_v50 = vpop.eup %3964 }
 0x3c1   :  { %v827_v51 = vsel %vm249_vm3, %v3965_v50, 0.0 }
 0x3c3   :  { %828 = vadd.xlane.f32.xlu0 %v827_v51 }
 0x44c   :  { %v826_v54 = vpop.xlane.xlu0 %825 }
 0x44d   :  { %3966 = vrcp.f32 %v826_v54 }
 0x450   :  { %v829_v57 = vpop.xlane.xlu0 %828 }
 0x451   :  { %3968 = vrcp.f32 %v829_v57 }
 0x455   :  { %v3475_v56 = vpop.f32.mrb[0].mxu0 }
 0x456   :  { %v350_v58 = vpop.f32.mrb[1].mxu0 }
 0x457   :  { %v3967_v5 = vpop.eup %3966 }
 0x458   :  { %v832_v14 = vmul.f32 %v3967_v5, %v3963_v48 }
 0x459   :  { %v3489_v61 = vpop.f32.mrb[2].mxu0 }
 0x45a   :  { %v550_v62 = vpop.f32.mrb[3].mxu0 }
 0x45b   :  { %3492 = vmatprep.mubr.msk.f32.mxu0 %vm165_vm1, %v550_v62  ;;  %v3969_v7 = vpop.eup %3968  ;;  %v1346_v62 = vld [vmem:[%s4630_s10 + $0x18] sm:$0xff] }
 0x45c   :  { %3493 = vmatmul.mubr.msk.f32.vlgmr.msra.gmra.mrb[4].mxu0 %vm165_vm1, %v3489_v61  ;;  %v3525_v0 = vpop.f32.mrb[8].mxu1  ;;  %v833_v15 = vmul.f32 %v3969_v7, %v3965_v50  ;;  %v1345_v61 = vld [vmem:[%s4630_s10 + $0x10] sm:$0xff]  ;;  %v1442_v7 = vld [vmem:[%s4632_s12 + $0x28] sm:$0xff] }
 0x45d   :  { %3496 = vmatpush3.msra.mxu0 %v155_v53  ;;  %3497 = vmatprep.mubr.msk.f32.mxu0 %vm165_vm1, %v350_v58  ;;  %v1086_v1 = vpop.f32.mrb[9].mxu1  ;;  %v1092_v3 = vadd.f32 %v3525_v0, %v4238_v35  ;;  %v1437_v0 = vld [vmem:[%s4632_s12] sm:$0xff] }
 0x45e   :  { %3727 = vmatprep.subr.bf16.mxu0 %v3726_v63  ;;  %v1087_v2 = vadd.f32 %v1086_v1, %v4243_v36  ;;  %v1438_v1 = vld [vmem:[%s4632_s12 + $0x8] sm:$0xff] }
 0x45f   :  { %v1098_v13 = vsel %vm249_vm3, %v1092_v3, -inf }
 0x460   :  { %v1095_v4 = vsel %vm249_vm3, %v1087_v2, -inf }
 0x461   :  { %1096 = vmax.xlane.f32.xlu0 %v1095_v4  ;;  %v1440_v4 = vld [vmem:[%s4632_s12 + $0x18] sm:$0xff] }
 0x464   :  { %3498 = vmatmul.mubr.msk.f32.vlgmr.msra.gmra.mrb[4].mxu0 %vm165_vm1, %v3475_v56 }
 0x465   :  { %3729 = vmatpush3.bf16.msra.mxu0 %v3726_v63  ;;  %1099 = vmax.xlane.f32.xlu0 %v1098_v13  ;;  %v3744_v63 = vpack.c.bf16 %v1346_v62, %v1345_v61  ;;  %v3244_v61 = vld [vmem:[%s4624_s4 + $0x38] sm:$0xff] }
 0x466   :  { %3511 = vmatprep.mubr.msk.f32.mxu0 %vm249_vm3, %v832_v14  ;;  %3514 = vmatprep.subr.mxu0 %v157_v9 }
 0x468   :  { %3512 = vmatmul.mubr.msk.f32.vlgmr.msra.gmra.mrb[6].mxu0 %vm249_vm3, %v833_v15 }
 0x469   :  { %3515 = vmatpush3.msra.mxu0 %v157_v9  ;;  %v3756_v9 = vpack.c.bf16 %v1442_v7, %v1441_v6  ;;  %v3239_v6 = vld [vmem:[%s4634_s14] ss:$0 sm:$0xff] }
 0x46a   :  { %3737 = vmatprep.subr.bf16.mxu0 %v3736_v16 }
 0x4ee   :  { %v1097_v18 = vpop.xlane.xlu0 %1096 }
 0x4ef   :  { %v1101_v19 = vsub.f32 %v1087_v2, %v1097_v18  ;;  %v1439_v2 = vld [vmem:[%s4632_s12 + $0x10] sm:$0xff] }
 0x4f0   :  { %v3752_v5 = vpack.c.bf16 %v1440_v4, %v1439_v2 }
 0x4f1   :  { %v1103_v20 = vmul.f32 1.442695, %v1101_v19  ;;  %v3231_v19 = vld [vmem:[%s4628_s8] ss:$0 sm:$0xff] }
 0x4f2   :  { %v1100_v22 = vpop.xlane.xlu0 %1099 }
 0x4f3   :  { %3970 = vpow2.f32 %v1103_v20  ;;  %v1102_v23 = vsub.f32 %v1092_v3, %v1100_v22  ;;  %v3748_v3 = vpack.c.bf16 %v1438_v1, %v1437_v0  ;;  %v3232_v22 = vld [vmem:[%s4629_s9] ss:$0 sm:$0xff] }
 0x4f5   :  { %v1105_v24 = vmul.f32 1.442695, %v1102_v23 }
 0x4f7   :  { %3972 = vpow2.f32 %v1105_v24 }
 0x4fd   :  { %v3971_v25 = vpop.eup %3970 }
 0x4fe   :  { %v1107_v26 = vsel %vm249_vm3, %v3971_v25, 0.0 }
 0x4ff   :  { %1108 = vadd.xlane.f32.xlu0 %v1107_v26 }
 0x501   :  { %v3973_v27 = vpop.eup %3972 }
 0x502   :  { %v1110_v17 = vsel %vm249_vm3, %v3973_v27, 0.0 }
 0x503   :  { %1111 = vadd.xlane.f32.xlu0 %v1110_v17 }
 0x53b   :  { %v3513_v28 = vpop.f32.mrb[6].mxu0 }
 0x53c   :  { %v912_v29 = vpop.f32.mrb[7].mxu0 }
 0x53d   :  { %3516 = vmatprep.mubr.msk.f32.mxu0 %vm165_vm1, %v912_v29  ;;  %v1444_v29 = vld [vmem:[%s4632_s12 + $0x38] sm:$0xff] }
 0x53e   :  { %3517 = vmatmul.mubr.msk.f32.vlgmr.msra.gmra.mrb[4].mxu0 %vm165_vm1, %v3513_v28  ;;  %v1443_v28 = vld [vmem:[%s4632_s12 + $0x30] sm:$0xff] }
 0x53f   :  { %3739 = vmatpush3.bf16.msra.mxu0 %v3736_v16 }
 0x540   :  { %3533 = vmatprep.subr.mxu0 %v158_v30 }
 0x58c   :  { %v1109_v31 = vpop.xlane.xlu0 %1108 }
 0x58d   :  { %3974 = vrcp.f32 %v1109_v31  ;;  %v3233_v31 = vld [vmem:[%s4631_s11] ss:$0 sm:$0xff] }
 0x590   :  { %v1112_v32 = vpop.xlane.xlu0 %1111 }
 0x591   :  { %3976 = vrcp.f32 %v1112_v32 }
 0x597   :  { %v3975_v33 = vpop.eup %3974 }
 0x598   :  { %v1115_v34 = vmul.f32 %v3975_v33, %v3971_v25 }
 0x59a   :  { %3530 = vmatprep.mubr.msk.f32.mxu0 %vm249_vm3, %v1115_v34 }
 0x59b   :  { %v3977_v37 = vpop.eup %3976 }
 0x59c   :  { %v1116_v38 = vmul.f32 %v3977_v37, %v3973_v27 }
 0x59e   :  { %3531 = vmatmul.mubr.msk.f32.vlgmr.msra.gmra.mrb[8].mxu0 %vm249_vm3, %v1116_v38 }
 0x59f   :  { %3534 = vmatpush3.msra.mxu0 %v158_v30  ;;  %v3760_v30 = vpack.c.bf16 %v1444_v29, %v1443_v28 }
 0x5a0   :  { %3749 = vmatprep.subr.bf16.mxu0 %v3748_v3 }
 0x671   :  { %v3532_v39 = vpop.f32.mrb[8].mxu0 }
 0x672   :  { %v1195_v40 = vpop.f32.mrb[9].mxu0 }
 0x673   :  { %3535 = vmatprep.mubr.msk.f32.mxu0 %vm165_vm1, %v1195_v40  ;;  %v3236_v40 = vld [vmem:[%s4633_s13] ss:$0 sm:$0xff] }
 0x674   :  { %3536 = vmatmul.mubr.msk.f32.vlgmr.msra.gmra.mrb[4].mxu0 %vm165_vm1, %v3532_v39 }
 0x675   :  { %3751 = vmatpush3.bf16.msra.mxu0 %v3748_v3 }
 0x676   :  { %3753 = vmatprep.subr.bf16.mxu0 %v3752_v5 }
 0x679   :  { %3755 = vmatpush3.bf16.msra.mxu0 %v3752_v5 }
 0x67a   :  { %3757 = vmatprep.subr.bf16.mxu0 %v3756_v9 }
 0x67d   :  { %3759 = vmatpush3.bf16.msra.mxu0 %v3756_v9  ;;  %v3240_v9 = vld [vmem:[%s4635_s15] ss:$0 sm:$0xff] }
 0x67e   :  { %3761 = vmatprep.subr.bf16.mxu0 %v3760_v30 }
 0x681   :  { %3763 = vmatpush3.bf16.msra.mxu0 %v3760_v30 }
 0x747   :  { %v3537_v42 = vpop.f32.mrb[4].mxu0 }
 0x748   :  { %v1295_v43 = vadd.f32 %v3537_v42, %v3230_v41  ;;  %v1276_v44 = vpop.f32.mrb[5].mxu0 }
 0x749   :  { %v1294_v45 = vadd.f32 %v3230_v41, %v1276_v44 }
 0x74a   :  { %v1297_v46 = vadd.f32 %v1295_v43, %v4180_v11 }
 0x74b   :  { %v1296_v47 = vadd.f32 %v1294_v45, %v4170_v8  ;;  %v1343_v8 = vld [vmem:[%s4630_s10] sm:$0xff] }
 0x74c   :  { %v1303_v48 = vsel %vm73_vm0, %v1297_v46, 0.0  ;;  %v3740_v60 = vpack.c.bf16 %v1344_v59, %v1343_v8  ;;  %v3242_v8 = vld [vmem:[%s4624_s4 + $0x28] sm:$0xff] }
 0x74d   :  { %1304 = vadd.xlane.f32.xlu1 %v1303_v48  ;;  %v1300_v49 = vsel %vm73_vm0, %v1296_v47, 0.0 }
 0x74e   :  { %1301 = vadd.xlane.f32.xlu0 %v1300_v49  ;;  %3741 = vmatprep.subr.bf16.mxu1 %v3740_v60 }
 0x74f   :  { %3743 = vmatpush3.bf16.msra.mxu1 %v3740_v60  ;;  %v3243_v60 = vld [vmem:[%s4624_s4 + $0x30] sm:$0xff] }
 0x750   :  { %3745 = vmatprep.subr.bf16.mxu1 %v3744_v63  ;;  %v3768_v62 = vpack.c.bf16 %v3244_v61, %v3243_v60 }
 0x753   :  { %3747 = vmatpush3.bf16.msra.mxu1 %v3744_v63 }
 0x7da   :  { %v1305_v50 = vpop.xlane.xlu1 %1304 }
 0x7db   :  { %v1308_v51 = vmul.f32 0.03125, %v1305_v50  ;;  %v1302_v52 = vpop.xlane.xlu0 %1301 }
 0x7dc   :  { %v1307_v53 = vmul.f32 0.03125, %v1302_v52 }
 0x7dd   :  { %v1310_v54 = vsub.f32 %v1297_v46, %v1308_v51 }
 0x7de   :  { %v1309_v55 = vsub.f32 %v1296_v47, %v1307_v53 }
 0x7df   :  { %v1312_v58 = vmul.f32 %v1310_v54, %v1310_v54 }
 0x7e0   :  { %v1311_v56 = vmul.f32 %v1309_v55, %v1309_v55 }
 0x7e1   :  { %v1316_v11 = vsel %vm73_vm0, %v1312_v58, 0.0 }
 0x7e2   :  { %v1313_v57 = vsel %vm73_vm0, %v1311_v56, 0.0 }
 0x7e3   :  { %1314 = vadd.xlane.f32.xlu0 %v1313_v57 }
 0x7e7   :  { %1317 = vadd.xlane.f32.xlu0 %v1316_v11  ;;  %v3241_v11 = vld [vmem:[%s4624_s4 + $0x20] sm:$0xff] }
 0x7e8   :  { %v3764_v59 = vpack.c.bf16 %v3242_v8, %v3241_v11 }
 0x7ea   :  { %3765 = vmatprep.subr.bf16.mxu1 %v3764_v59 }
 0x870   :  { %v1315_v10 = vpop.xlane.xlu0 %1314 }
 0x871   :  { %v1319_v12 = vmul.f32 0.03125, %v1315_v10 }
 0x873   :  { %v1321_v13 = vadd.f32 1e-05, %v1319_v12 }
 0x874   :  { %v1318_v14 = vpop.xlane.xlu0 %1317 }
 0x875   :  { %3978 = vrsqrt.f32 %v1321_v13  ;;  %v1320_v15 = vmul.f32 0.03125, %v1318_v14 }
 0x877   :  { %v1322_v16 = vadd.f32 1e-05, %v1320_v15 }
 0x879   :  { %3980 = vrsqrt.f32 %v1322_v16 }
 0x87f   :  { %v3979_v18 = vpop.eup %3978 }
 0x880   :  { %v1325_v20 = vmul.f32 %v3979_v18, %v1309_v55  ;;  %v3246_v18 = vld [vmem:[%s4625_s5 + $0x1] ss:$0 sm:$0xff]  ;;  %s4648_s5 = smov 72  }
 0x882   :  { %v1333_v23 = vmul.f32 %v3231_v19, %v1325_v20 }
 0x883   :  { %v3981_v24 = vpop.eup %3980 }
 0x884   :  { %v1326_v25 = vmul.f32 %v3981_v24, %v1310_v54  ;;  %v1341_v26 = vadd.f32 %v3232_v22, %v1333_v23 }
 0x886   :  { %v1334_v27 = vmul.f32 %v3231_v19, %v1326_v25  ;;  %3546 = vmatprep.mubr.msk.f32.mxu1 %vm73_vm0, %v1341_v26 }
 0x888   :  { %v1342_v17 = vadd.f32 %v3232_v22, %v1334_v27 }
 0x88a   :  { %3547 = vmatmul.mubr.msk.f32.vlgmr.msra.gmra.mrb[10].mxu1 %vm73_vm0, %v1342_v17 }
 0x88b   :  { %3767 = vmatpush3.bf16.msra.mxu1 %v3764_v59 }
 0x88c   :  { %3769 = vmatprep.subr.bf16.mxu1 %v3768_v62 }
 0x88f   :  { %3771 = vmatpush3.bf16.msra.mxu1 %v3768_v62 }
 0x95d   :  { %v3548_v32 = vpop.f32.mrb[10].mxu1 }
 0x95e   :  { %v1432_v33 = vadd.f32 %v3548_v32, %v3233_v31  ;;  %v1426_v34 = vpop.f32.mrb[11].mxu1 }
 0x95f   :  { %v1427_v37 = vadd.f32 %v3233_v31, %v1426_v34 }
 0x960   :  { %v1436_v39 = vmax.f32 %v1432_v33, 0.0 }
 0x961   :  { %v1435_v38 = vmax.f32 %v1427_v37, 0.0 }
 0x963   :  { %3565 = vmatprep.mubr.msk.f32.mxu0 %vm1452_vm4, %v1435_v38 }
 0x964   :  { %3566 = vmatmul.mubr.msk.f32.vlgmr.msra.gmra.mrb[10].mxu0 %vm1452_vm4, %v1436_v39 }
 0xa37   :  { %v3567_v41 = vpop.f32.mrb[10].mxu0 }
 0xa38   :  { %v1525_v42 = vpop.f32.mrb[11].mxu0  ;;  %v1531_v43 = vadd.f32 %v3567_v41, %v3236_v40 }
 0xa39   :  { %v1526_v44 = vadd.f32 %v3236_v40, %v1525_v42 }
 0xa3a   :  { %v1535_v47 = vadd.f32 %v1531_v43, %v1342_v17 }
 0xa3b   :  { %v1534_v45 = vadd.f32 %v1526_v44, %v1341_v26 }
 0xa3c   :  { %v1541_v48 = vsel %vm73_vm0, %v1535_v47, 0.0 }
 0xa3d   :  { %v1538_v46 = vsel %vm73_vm0, %v1534_v45, 0.0 }
 0xa3e   :  { %1539 = vadd.xlane.f32.xlu0 %v1538_v46 }
 0xa42   :  { %1542 = vadd.xlane.f32.xlu0 %v1541_v48 }
 0xacb   :  { %v1540_v49 = vpop.xlane.xlu0 %1539 }
 0xacc   :  { %v1544_v50 = vmul.f32 0.03125, %v1540_v49 }
 0xace   :  { %v1546_v51 = vsub.f32 %v1534_v45, %v1544_v50 }
 0xacf   :  { %v1543_v52 = vpop.xlane.xlu0 %1542 }
 0xad0   :  { %v1545_v53 = vmul.f32 0.03125, %v1543_v52  ;;  %v1548_v54 = vmul.f32 %v1546_v51, %v1546_v51 }
 0xad2   :  { %v1547_v55 = vsub.f32 %v1535_v47, %v1545_v53  ;;  %v1550_v56 = vsel %vm73_vm0, %v1548_v54, 0.0 }
 0xad3   :  { %1551 = vadd.xlane.f32.xlu0 %v1550_v56 }
 0xad4   :  { %v1549_v57 = vmul.f32 %v1547_v55, %v1547_v55 }
 0xad6   :  { %v1553_v58 = vsel %vm73_vm0, %v1549_v57, 0.0 }
 0xad7   :  { %1554 = vadd.xlane.f32.xlu0 %v1553_v58 }
 0xb60   :  { %v1552_v63 = vpop.xlane.xlu0 %1551 }
 0xb61   :  { %v1556_v0 = vmul.f32 0.03125, %v1552_v63 }
 0xb63   :  { %v1558_v1 = vadd.f32 1e-05, %v1556_v0 }
 0xb64   :  { %v1555_v2 = vpop.xlane.xlu0 %1554 }
 0xb65   :  { %3982 = vrsqrt.f32 %v1558_v1  ;;  %v1557_v3 = vmul.f32 0.03125, %v1555_v2 }
 0xb67   :  { %v1559_v4 = vadd.f32 1e-05, %v1557_v3 }
 0xb69   :  { %3984 = vrsqrt.f32 %v1559_v4 }
 0xb6f   :  { %v3983_v5 = vpop.eup %3982 }
 0xb70   :  { %v1562_v7 = vmul.f32 %v3983_v5, %v1546_v51 }
 0xb72   :  { %v1570_v10 = vmul.f32 %v3239_v6, %v1562_v7 }
 0xb73   :  { %v3985_v12 = vpop.eup %3984 }
 0xb74   :  { %v1563_v13 = vmul.f32 %v3985_v12, %v1547_v55  ;;  %v4404_v14 = vadd.f32 %v3240_v9, %v1570_v10 }
 0xb76   :  { %v1571_v15 = vmul.f32 %v3239_v6, %v1563_v13  ;;  %3576 = vmatprep.mubr.msk.f32.mxu1 %vm73_vm0, %v4404_v14 }
 0xb78   :  { %v4408_v16 = vadd.f32 %v3240_v9, %v1571_v15 }
 0xb7a   :  { %3577 = vmatmul.mubr.msk.f32.vlgmr.msra.gmra.mrb[12].mxu1 %vm73_vm0, %v4408_v16 }
 0xc4d   :  { %v3578_v19 = vpop.f32.mrb[12].mxu1 }
 0xc4e   :  { %v4415_v20 = vadd.f32 %v3578_v19, %v3246_v18  ;;  %v1665_v22 = vpop.f32.mrb[13].mxu1 }
 0xc4f   :  { %v4417_v23 = vadd.f32 %v3246_v18, %v1665_v22 }
 0xc51   :  { %3583 = vmatprep.mubr.msk.f32.mxu1 %vm165_vm1, %v4417_v23  ;;  %v4423_v24 = vpack.i.bf16 %v4415_v20, %v4417_v23 }
 0xc53   :  { %3912 = vrot.lane.b32.xlu1 %v4423_v24, %s4054_s26  ;;  %3907 = vrot.lane.b32.xlu0 %v4423_v24, %s4053_s1  ;;  %s4650_s1 = smov 56   ;;  %s4651_s26 = smov 48  }
 0xc57   :  { %3917 = vrot.lane.b32.xlu1 %v4423_v24, %s4056_s28  ;;  %1877 = vrot.lane.b32.xlu0 %v4417_v23, %s4052_s25 }
 0xc5b   :  { %2241 = vrot.lane.b32.xlu1 %v4415_v20, %s4055_s27  ;;  %1879 = vrot.lane.b32.xlu0 %v4415_v20, %s4052_s25  ;;  %s4649_s25 = smov 104  }
 0xc5f   :  { %2239 = vrot.lane.b32.xlu0 %v4417_v23, %s4055_s27 }
 0xcc5   :  { %v3913_v25 = vpop.permute.xlu1 %3912  ;;  %v3908_v26 = vpop.permute.xlu0 %3907 }
 0xcc6   :  { %v3915_v27 = vunpack.i.h.bf16 %v3913_v25  ;;  %v3914_v17 = vunpack.i.l.bf16 %v3913_v25  ;;  %v3910_v28 = vunpack.i.h.bf16 %v3908_v26  ;;  %v3909_v29 = vunpack.i.l.bf16 %v3908_v26 }
 0xcc8   :  { %v3772_v30 = vpack.c.bf16 %v3910_v28, %v3909_v29  ;;  %v3782_v31 = vpack.c.bf16 %v3915_v27, %v3914_v17 }
 0xcc9   :  { %v3918_v32 = vpop.permute.xlu1 %3917  ;;  %v1878_v37 = vpop.permute.xlu0 %1877 }
 0xcca   :  { %3774 = vmatprep.subr.msk.bf16.mxu1 %vm4213_vm2, %v3772_v30  ;;  %v3920_v33 = vunpack.i.h.bf16 %v3918_v32  ;;  %v3919_v34 = vunpack.i.l.bf16 %v3918_v32 }
 0xccb   :  { %3777 = vmatpush3.bf16.xpose.msk.msra.mxu1 %vm4213_vm2, %v3772_v30 }
 0xccc   :  { %3784 = vmatprep.subr.msk.bf16.mxu1 %vm4213_vm2, %v3782_v31  ;;  %v3792_v38 = vpack.c.bf16 %v3920_v33, %v3919_v34 }
 0xccd   :  { %v1880_v39 = vpop.permute.xlu0 %1879  ;;  %v2242_v41 = vpop.permute.xlu1 %2241 }
 0xcd1   :  { %v2240_v40 = vpop.permute.xlu0 %2239 }
 0xcd2   :  { %3584 = vmatmul.mubr.msk.f32.vlgmr.msra.gmra.mrb[14].mxu1 %vm165_vm1, %v4415_v20 }
 0xcd3   :  { %3787 = vmatpush3.bf16.xpose.msk.msra.mxu1 %vm4213_vm2, %v3782_v31  ;;  %3597 = vmatprep.mubr.msk.f32.mxu1 %vm165_vm1, %v1878_v37 }
 0xcd4   :  { %3794 = vmatprep.subr.msk.bf16.mxu1 %vm4213_vm2, %v3792_v38 }
 0xcda   :  { %3598 = vmatmul.mubr.msk.f32.vlgmr.msra.gmra.mrb[16].mxu1 %vm165_vm1, %v1880_v39 }
 0xcdb   :  { %3797 = vmatpush3.bf16.xpose.msk.msra.mxu1 %vm4213_vm2, %v3792_v38  ;;  %3621 = vmatprep.mubr.msk.f32.mxu1 %vm165_vm1, %v2240_v40 }
 0xce2   :  { %3622 = vmatmul.mubr.msk.f32.vlgmr.msra.gmra.mrb[18].mxu1 %vm165_vm1, %v2242_v41 }
 0xda5   :  { %v3585_v42 = vpop.f32.mrb[14].mxu1 }
 0xda6   :  { %v1765_v43 = vadd.f32 %v3585_v42, %v4238_v35  ;;  %v1759_v44 = vpop.f32.mrb[15].mxu1 }
 0xda7   :  { %v1760_v45 = vadd.f32 %v1759_v44, %v4243_v36 }
 0xda8   :  { %v1771_v46 = vsel %vm249_vm3, %v1765_v43, -inf }
 0xda9   :  { %1772 = vmax.xlane.f32.xlu1 %v1771_v46  ;;  %v1768_v47 = vsel %vm249_vm3, %v1760_v45, -inf }
 0xdaa   :  { %1769 = vmax.xlane.f32.xlu0 %v1768_v47 }
 0xdad   :  { %v3599_v48 = vpop.f32.mrb[16].mxu1 }
 0xdae   :  { %v1959_v49 = vpop.f32.mrb[17].mxu1  ;;  %v1965_v51 = vadd.f32 %v3599_v48, %v4238_v35 }
 0xdaf   :  { %v1960_v50 = vadd.f32 %v1959_v49, %v4243_v36 }
 0xdb0   :  { %v1971_v54 = vsel %vm249_vm3, %v1965_v51, -inf }
 0xdb1   :  { %v1968_v52 = vsel %vm249_vm3, %v1960_v50, -inf }
 0xdb2   :  { %1969 = vmax.xlane.f32.xlu0 %v1968_v52 }
 0xdb5   :  { %v3623_v53 = vpop.f32.mrb[18].mxu1 }
 0xdb6   :  { %v2321_v55 = vpop.f32.mrb[19].mxu1  ;;  %1972 = vmax.xlane.f32.xlu0 %v1971_v54  ;;  %v2327_v12 = vadd.f32 %v3623_v53, %v4238_v35 }
 0xdb7   :  { %v2322_v13 = vadd.f32 %v2321_v55, %v4243_v36  ;;  %v3250_v55 = vld [vmem:[%s4626_s6 + $0x28] sm:$0xff] }
 0xdb8   :  { %v2333_v18 = vsel %vm249_vm3, %v2327_v12, -inf }
 0xdb9   :  { %v2330_v15 = vsel %vm249_vm3, %v2322_v13, -inf }
 0xe36   :  { %v1773_v56 = vpop.xlane.xlu1 %1772 }
 0xe37   :  { %v1775_v57 = vsub.f32 %v1765_v43, %v1773_v56  ;;  %v1770_v58 = vpop.xlane.xlu0 %1769  ;;  %v3249_v56 = vld [vmem:[%s4626_s6 + $0x20] sm:$0xff] }
 0xe38   :  { %v1774_v11 = vsub.f32 %v1760_v45, %v1770_v58 }
 0xe39   :  { %v1778_v8 = vmul.f32 1.442695, %v1775_v57 }
 0xe3a   :  { %v1776_v59 = vmul.f32 1.442695, %v1774_v11 }
 0xe3b   :  { %3986 = vpow2.f32 %v1778_v8 }
 0xe3c   :  { %3988 = vpow2.f32 %v1776_v59 }
 0xe3f   :  { %v1970_v60 = vpop.xlane.xlu0 %1969 }
 0xe40   :  { %v1974_v61 = vsub.f32 %v1960_v50, %v1970_v60 }
 0xe42   :  { %v1976_v62 = vmul.f32 1.442695, %v1974_v61 }
 0xe43   :  { %v1973_v63 = vpop.xlane.xlu0 %1972 }
 0xe44   :  { %3990 = vpow2.f32 %v1976_v62  ;;  %v1975_v0 = vsub.f32 %v1965_v51, %v1973_v63 }
 0xe45   :  { %v3987_v1 = vpop.eup %3986 }
 0xe46   :  { %v3989_v2 = vpop.eup %3988  ;;  %v1978_v3 = vmul.f32 1.442695, %v1975_v0  ;;  %v1783_v4 = vsel %vm249_vm3, %v3987_v1, 0.0 }
 0xe47   :  { %1784 = vadd.xlane.f32.xlu0 %v1783_v4  ;;  %v1780_v5 = vsel %vm249_vm3, %v3989_v2, 0.0  ;;  %v4026_v4 = vld [vmem:[%s4622_s2] sm:$0xff] }
 0xe48   :  { %3992 = vpow2.f32 %v1978_v3  ;;  %1781 = vadd.xlane.f32.xlu1 %v1780_v5 }
 0xe4e   :  { %v3991_v6 = vpop.eup %3990 }
 0xe4f   :  { %v1980_v7 = vsel %vm249_vm3, %v3991_v6, 0.0 }
 0xe50   :  { %1981 = vadd.xlane.f32.xlu1 %v1980_v7 }
 0xe52   :  { %v3993_v9 = vpop.eup %3992 }
 0xe53   :  { %v1983_v10 = vsel %vm249_vm3, %v3993_v9, 0.0 }
 0xe54   :  { %1984 = vadd.xlane.f32.xlu0 %v1983_v10 }
 0xe61   :  { %3922 = vrot.lane.b32.xlu1 %v4423_v24, %s4059_s20 }
 0xe65   :  { %3932 = vrot.lane.b32.xlu1 %v4423_v24, %s4648_s5 }
 0xe69   :  { %2522 = vrot.lane.b32.xlu1 %v4417_v23, %s4649_s25 }
 0xe6a   :  { %3927 = vrot.lane.b32.xlu0 %v4423_v24, %s4650_s1 }
 0xe6e   :  { %2524 = vrot.lane.b32.xlu0 %v4415_v20, %s4649_s25 }
 0xe8d   :  { %2331 = vmax.xlane.f32.xlu1 %v2330_v15  ;;  %2334 = vmax.xlane.f32.xlu0 %v2333_v18  ;;  %v3251_v18 = vld [vmem:[%s4626_s6 + $0x30] sm:$0xff] }
 0xed4   :  { %v1785_v22 = vpop.xlane.xlu0 %1784 }
 0xed5   :  { %v1782_v19 = vpop.xlane.xlu1 %1781 }
 0xed6   :  { %3994 = vrcp.f32 %v1782_v19 }
 0xed7   :  { %3996 = vrcp.f32 %v1785_v22 }
 0xedd   :  { %v1982_v23 = vpop.xlane.xlu1 %1981 }
 0xede   :  { %3998 = vrcp.f32 %v1982_v23 }
 0xee0   :  { %v3995_v25 = vpop.eup %3994 }
 0xee1   :  { %v3923_v26 = vpop.permute.xlu1 %3922  ;;  %v1985_v27 = vpop.xlane.xlu0 %1984  ;;  %v1788_v20 = vmul.f32 %v3995_v25, %v3989_v2 }
 0xee2   :  { %v3925_v17 = vunpack.i.h.bf16 %v3923_v26  ;;  %v3924_v35 = vunpack.i.l.bf16 %v3923_v26  ;;  %4000 = vrcp.f32 %v1985_v27  ;;  %v3997_v28 = vpop.eup %3996 }
 0xee3   :  { %3590 = vmatprep.mubr.msk.f32.mxu0 %vm249_vm3, %v1788_v20  ;;  %v1789_v38 = vmul.f32 %v3997_v28, %v3987_v1 }
 0xee4   :  { %v3778_v36 = vpack.c.bf16 %v3925_v17, %v3924_v35 }
 0xee5   :  { %v3933_v29 = vpop.permute.xlu1 %3932  ;;  %v3928_v30 = vpop.permute.xlu0 %3927 }
 0xee6   :  { %v3935_v31 = vunpack.i.h.bf16 %v3933_v29  ;;  %v3934_v32 = vunpack.i.l.bf16 %v3933_v29  ;;  %v3930_v33 = vunpack.i.h.bf16 %v3928_v30  ;;  %v3929_v34 = vunpack.i.l.bf16 %v3928_v30  ;;  %3779 = vmatprep.subr.bf16.mxu0 %v3778_v36 }
 0xee7   :  { %3781 = vmatpush3.bf16.msra.mxu0 %v3778_v36 }
 0xee8   :  { %v3999_v37 = vpop.eup %3998  ;;  %v3802_v39 = vpack.c.bf16 %v3935_v31, %v3934_v32  ;;  %v3788_v40 = vpack.c.bf16 %v3930_v33, %v3929_v34 }
 0xee9   :  { %v2523_v41 = vpop.permute.xlu1 %2522  ;;  %v1988_v42 = vmul.f32 %v3999_v37, %v3991_v6  ;;  %v2525_v45 = vpop.permute.xlu0 %2524  ;;  %v4027_v6 = vld [vmem:[%s4622_s2 + $0x8] sm:$0xff]  ;;  %s4652_s2 = smov 40  }
 0xeea   :  { %3591 = vmatmul.mubr.msk.f32.vlgmr.msra.gmra.mrb[12].mxu0 %vm249_vm3, %v1789_v38  ;;  %3789 = vmatprep.subr.bf16.mxu0 %v3788_v40  ;;  %v3252_v38 = vld [vmem:[%s4626_s6 + $0x38] sm:$0xff] }
 0xeeb   :  { %3804 = vmatprep.subr.msk.bf16.mxu1 %vm4213_vm2, %v3802_v39  ;;  %3640 = vmatprep.mubr.msk.f32.mxu1 %vm165_vm1, %v2523_v41 }
 0xeec   :  { %v4001_v43 = vpop.eup %4000  ;;  %3791 = vmatpush3.bf16.msra.mxu0 %v3788_v40  ;;  %3604 = vmatprep.mubr.msk.f32.mxu0 %vm249_vm3, %v1988_v42 }
 0xeed   :  { %v1989_v44 = vmul.f32 %v4001_v43, %v3993_v9  ;;  %3807 = vmatpush3.bf16.xpose.msk.msra.mxu1 %vm4213_vm2, %v3802_v39  ;;  %3607 = vmatprep.subr.mxu0 %v3250_v55 }
 0xeef   :  { %3605 = vmatmul.mubr.msk.f32.vlgmr.msra.gmra.mrb[14].mxu0 %vm249_vm3, %v1989_v44  ;;  %v3286_v44 = vld [vmem:[%s4627_s7 + $0x1] ss:$0 sm:$0xff] }
 0xef0   :  { %3608 = vmatpush3.msra.mxu0 %v3250_v55 }
 0xef1   :  { %3612 = vmatprep.subr.mxu0 %v3249_v56 }
 0xef4   :  { %3641 = vmatmul.mubr.msk.f32.vlgmr.msra.gmra.mrb[20].mxu1 %vm165_vm1, %v2525_v45 }
 0xf1a   :  { %v2332_v46 = vpop.xlane.xlu1 %2331  ;;  %v2335_v47 = vpop.xlane.xlu0 %2334 }
 0xf1b   :  { %v2336_v48 = vsub.f32 %v2322_v13, %v2332_v46  ;;  %v2337_v49 = vsub.f32 %v2327_v12, %v2335_v47 }
 0xf1d   :  { %v2338_v50 = vmul.f32 1.442695, %v2336_v48  ;;  %v2340_v51 = vmul.f32 1.442695, %v2337_v49 }
 0xf1f   :  { %4002 = vpow2.f32 %v2338_v50 }
 0xf20   :  { %4004 = vpow2.f32 %v2340_v51 }
 0xf29   :  { %v4003_v52 = vpop.eup %4002 }
 0xf2a   :  { %v4005_v53 = vpop.eup %4004  ;;  %v2342_v54 = vsel %vm249_vm3, %v4003_v52, 0.0 }
 0xf2b   :  { %2343 = vadd.xlane.f32.xlu0 %v2342_v54  ;;  %v2345_v21 = vsel %vm249_vm3, %v4005_v53, 0.0 }
 0xf2c   :  { %2346 = vadd.xlane.f32.xlu1 %v2345_v21 }
 0xf41   :  { %3937 = vrot.lane.b32.xlu0 %v4423_v24, %s4651_s26 }
 0xfb8   :  { %v2344_v57 = vpop.xlane.xlu0 %2343 }
 0xfb9   :  { %v2347_v59 = vpop.xlane.xlu1 %2346  ;;  %4006 = vrcp.f32 %v2344_v57 }
 0xfba   :  { %4008 = vrcp.f32 %v2347_v59  ;;  %v3292_v59 = vld [vmem:[%s4630_s10 + $0x28] sm:$0xff] }
 0xfbc   :  { %v3938_v11 = vpop.permute.xlu0 %3937 }
 0xfbd   :  { %v3592_v58 = vpop.f32.mrb[12].mxu0  ;;  %v3940_v60 = vunpack.i.h.bf16 %v3938_v11  ;;  %v3939_v61 = vunpack.i.l.bf16 %v3938_v11 }
 0xfbe   :  { %v1868_v8 = vpop.f32.mrb[13].mxu0 }
 0xfbf   :  { %v3798_v0 = vpack.c.bf16 %v3940_v60, %v3939_v61  ;;  %v3293_v61 = vld [vmem:[%s4630_s10 + $0x30] sm:$0xff] }
 0xfc2   :  { %v3606_v62 = vpop.f32.mrb[14].mxu0 }
 0xfc3   :  { %v2068_v63 = vpop.f32.mrb[15].mxu0  ;;  %v4007_v3 = vpop.eup %4006 }
 0xfc4   :  { %3609 = vmatprep.mubr.msk.f32.mxu0 %vm165_vm1, %v2068_v63  ;;  %v4009_v10 = vpop.eup %4008  ;;  %v2350_v12 = vmul.f32 %v4007_v3, %v4003_v52 }
 0xfc5   :  { %3610 = vmatmul.mubr.msk.f32.vlgmr.msra.gmra.mrb[16].mxu0 %vm165_vm1, %v3606_v62  ;;  %v2351_v13 = vmul.f32 %v4009_v10, %v4005_v53  ;;  %v3294_v62 = vld [vmem:[%s4630_s10 + $0x38] sm:$0xff] }
 0xfc6   :  { %3613 = vmatpush3.msra.mxu0 %v3249_v56  ;;  %3614 = vmatprep.mubr.msk.f32.mxu0 %vm165_vm1, %v1868_v8  ;;  %v3816_v63 = vpack.c.bf16 %v3294_v62, %v3293_v61 }
 0xfc7   :  { %v3642_v1 = vpop.f32.mrb[20].mxu1  ;;  %3799 = vmatprep.subr.bf16.mxu0 %v3798_v0 }
 0xfc8   :  { %v2604_v2 = vpop.f32.mrb[21].mxu1  ;;  %v2610_v7 = vadd.f32 %v4027_v6, %v3642_v1  ;;  %v3300_v1 = vld [vmem:[%s4632_s12 + $0x48] sm:$0xff]  ;;  %v3303_v6 = vld [vmem:[%s4632_s12 + $0x60] sm:$0xff] }
 0xfc9   :  { %v2605_v5 = vadd.f32 %v4026_v4, %v2604_v2  ;;  %v3301_v2 = vld [vmem:[%s4632_s12 + $0x50] sm:$0xff]  ;;  %v3302_v4 = vld [vmem:[%s4632_s12 + $0x58] sm:$0xff] }
 0xfca   :  { %v2616_v15 = vsel %vm249_vm3, %v2610_v7, -inf }
 0xfcb   :  { %v2613_v9 = vsel %vm249_vm3, %v2605_v5, -inf }
 0xfcc   :  { %2614 = vmax.xlane.f32.xlu1 %v2613_v9 }
 0xfcd   :  { %3615 = vmatmul.mubr.msk.f32.vlgmr.msra.gmra.mrb[16].mxu0 %vm165_vm1, %v3592_v58 }
 0xfce   :  { %3801 = vmatpush3.bf16.msra.mxu0 %v3798_v0  ;;  %3628 = vmatprep.mubr.msk.f32.mxu0 %vm249_vm3, %v2350_v12  ;;  %v3299_v0 = vld [vmem:[%s4632_s12 + $0x40] sm:$0xff] }
 0xfcf   :  { %3631 = vmatprep.subr.mxu0 %v3251_v18  ;;  %v3820_v3 = vpack.c.bf16 %v3300_v1, %v3299_v0  ;;  %v3313_v0 = vld [vmem:[%s4634_s14 + $0x1] ss:$0 sm:$0xff]  ;;  %s3187_s14 = sshll.u32 %s4066_s17, 4  ;;  %s3188_s14 = int_to_ptr.vmem [resolvable:$true] %s3187_s14 }
 0xfd0   :  { %2617 = vmax.xlane.f32.xlu1 %v2616_v15  ;;  %s4028_s24 = scalar_lea.vmem %s3188_s14, 32  ;;  %p4033_p1 = scmp.lt.s32.totalorder %s3188_s14, %s3188_s14 }
 0xfd1   :  { %3629 = vmatmul.mubr.msk.f32.vlgmr.msra.gmra.mrb[18].mxu0 %vm249_vm3, %v2351_v13  ;;  %p4029_p0 = scmp.ne.s32.totalorder %s3188_s14, %s4028_s24  ;;  %p4034_p2 = scmp.lt.s32.totalorder %s4028_s24, %s4028_s24 }
 0xfd2   :  { %3632 = vmatpush3.msra.mxu0 %v3251_v18 }
 0xfd3   :  { %p4035_p3 = por %p4034_p2, %p4033_p1 }
 0xfd5   :  { %p4036_p4 = pnand %p4035_p3, %p4029_p0 }
0x1059   :  { %v2615_v19 = vpop.xlane.xlu1 %2614 }
0x105a   :  { %v2619_v22 = vsub.f32 %v2605_v5, %v2615_v19  ;;  %v3824_v5 = vpack.c.bf16 %v3302_v4, %v3301_v2  ;;  %v3314_v4 = vld [vmem:[%s4635_s15 + $0x1] ss:$0 sm:$0xff] }
0x105c   :  { %v2621_v26 = vmul.f32 1.442695, %v2619_v22 }
0x105d   :  { %v2618_v23 = vpop.xlane.xlu1 %2617 }
0x105e   :  { %v2620_v25 = vsub.f32 %v2610_v7, %v2618_v23  ;;  %v3304_v7 = vld [vmem:[%s4632_s12 + $0x68] sm:$0xff]  ;;  %v3289_v23 = vld [vmem:[%s4628_s8 + $0x1] ss:$0 sm:$0xff] }
0x105f   :  { %v3828_v9 = vpack.c.bf16 %v3304_v7, %v3303_v6 }
0x1060   :  { %v2623_v27 = vmul.f32 1.442695, %v2620_v25 }
0x1062   :  { %4010 = vpow2.f32 %v2623_v27 }
0x1063   :  { %4012 = vpow2.f32 %v2621_v26  ;;  %v3290_v26 = vld [vmem:[%s4629_s9 + $0x1] ss:$0 sm:$0xff] }
0x106c   :  { %v4011_v20 = vpop.eup %4010 }
0x106d   :  { %v2628_v17 = vsel %vm249_vm3, %v4011_v20, 0.0  ;;  %v4013_v35 = vpop.eup %4012 }
0x106e   :  { %2629 = vadd.xlane.f32.xlu1 %v2628_v17  ;;  %v2625_v36 = vsel %vm249_vm3, %v4013_v35, 0.0 }
0x1072   :  { %2626 = vadd.xlane.f32.xlu1 %v2625_v36 }
0x1083   :  { %3942 = vrot.lane.b32.xlu1 %v4423_v24, %s4652_s2 }
0x10a4   :  { %v3630_v28 = vpop.f32.mrb[18].mxu0 }
0x10a5   :  { %v2430_v29 = vpop.f32.mrb[19].mxu0 }
0x10a6   :  { %3633 = vmatprep.mubr.msk.f32.mxu0 %vm165_vm1, %v2430_v29  ;;  %v3305_v29 = vld [vmem:[%s4632_s12 + $0x70] sm:$0xff] }
0x10a7   :  { %3634 = vmatmul.mubr.msk.f32.vlgmr.msra.gmra.mrb[16].mxu0 %vm165_vm1, %v3630_v28 }
0x10fb   :  { %v2630_v30 = vpop.xlane.xlu1 %2629 }
0x10fc   :  { %4014 = vrcp.f32 %v2630_v30  ;;  %v3306_v30 = vld [vmem:[%s4632_s12 + $0x78] sm:$0xff] }
0x10ff   :  { %v2627_v31 = vpop.xlane.xlu1 %2626 }
0x1100   :  { %4016 = vrcp.f32 %v2627_v31  ;;  %v3832_v31 = vpack.c.bf16 %v3306_v30, %v3305_v29 }
0x1103   :  { %v3943_v32 = vpop.permute.xlu1 %3942 }
0x1104   :  { %v3945_v33 = vunpack.i.h.bf16 %v3943_v32  ;;  %v3944_v34 = vunpack.i.l.bf16 %v3943_v32  ;;  %v3296_v32 = vld [vmem:[%s4631_s11 + $0x1] ss:$0 sm:$0xff] }
0x1106   :  { %v3808_v37 = vpack.c.bf16 %v3945_v33, %v3944_v34  ;;  %v4015_v24 = vpop.eup %4014 }
0x1107   :  { %v2634_v41 = vmul.f32 %v4015_v24, %v4011_v20 }
0x1108   :  { %3809 = vmatprep.subr.bf16.mxu0 %v3808_v37 }
0x1109   :  { %3811 = vmatpush3.bf16.msra.mxu0 %v3808_v37 }
0x110a   :  { %v4017_v39 = vpop.eup %4016  ;;  %3650 = vmatprep.subr.mxu0 %v3252_v38 }
0x110b   :  { %v2633_v40 = vmul.f32 %v4017_v39, %v4013_v35 }
0x110d   :  { %3647 = vmatprep.mubr.msk.f32.mxu0 %vm249_vm3, %v2633_v40  ;;  %v3308_v40 = vld [vmem:[%s4633_s13 + $0x1] ss:$0 sm:$0xff] }
0x110e   :  { %3648 = vmatmul.mubr.msk.f32.vlgmr.msra.gmra.mrb[20].mxu0 %vm249_vm3, %v2634_v41 }
0x110f   :  { %3651 = vmatpush3.msra.mxu0 %v3252_v38 }
0x1110   :  { %3821 = vmatprep.subr.bf16.mxu0 %v3820_v3 }
0x11e1   :  { %v3649_v42 = vpop.f32.mrb[20].mxu0 }
0x11e2   :  { %v2713_v43 = vpop.f32.mrb[21].mxu0 }
0x11e3   :  { %3652 = vmatprep.mubr.msk.f32.mxu0 %vm165_vm1, %v2713_v43 }
0x11e4   :  { %3653 = vmatmul.mubr.msk.f32.vlgmr.msra.gmra.mrb[16].mxu0 %vm165_vm1, %v3649_v42 }
0x11e5   :  { %3823 = vmatpush3.bf16.msra.mxu0 %v3820_v3 }
0x11e6   :  { %3825 = vmatprep.subr.bf16.mxu0 %v3824_v5 }
0x11e9   :  { %3827 = vmatpush3.bf16.msra.mxu0 %v3824_v5 }
0x11ea   :  { %3829 = vmatprep.subr.bf16.mxu0 %v3828_v9 }
0x11ed   :  { %3831 = vmatpush3.bf16.msra.mxu0 %v3828_v9 }
0x11ee   :  { %3833 = vmatprep.subr.bf16.mxu0 %v3832_v31 }
0x11f1   :  { %3835 = vmatpush3.bf16.msra.mxu0 %v3832_v31 }
0x12b7   :  { %v3654_v45 = vpop.f32.mrb[16].mxu0 }
0x12b8   :  { %v2814_v46 = vadd.f32 %v3654_v45, %v3286_v44  ;;  %v2794_v47 = vpop.f32.mrb[17].mxu0 }
0x12b9   :  { %v2813_v48 = vadd.f32 %v3286_v44, %v2794_v47 }
0x12ba   :  { %v2816_v49 = vadd.f32 %v2814_v46, %v4408_v16 }
0x12bb   :  { %v2815_v50 = vadd.f32 %v2813_v48, %v4404_v14  ;;  %v3291_v14 = vld [vmem:[%s4630_s10 + $0x20] sm:$0xff] }
0x12bc   :  { %v2824_v51 = vsel %vm73_vm0, %v2816_v49, 0.0  ;;  %v3812_v60 = vpack.c.bf16 %v3292_v59, %v3291_v14 }
0x12bd   :  { %2825 = vadd.xlane.f32.xlu1 %v2824_v51  ;;  %v2821_v52 = vsel %vm73_vm0, %v2815_v50, 0.0 }
0x12be   :  { %2822 = vadd.xlane.f32.xlu0 %v2821_v52  ;;  %3813 = vmatprep.subr.bf16.mxu1 %v3812_v60 }
0x12bf   :  { %3815 = vmatpush3.bf16.msra.mxu1 %v3812_v60 }
0x12c0   :  { %3817 = vmatprep.subr.bf16.mxu1 %v3816_v63 }
0x12c3   :  { %3819 = vmatpush3.bf16.msra.mxu1 %v3816_v63 }
0x134a   :  { %v2826_v53 = vpop.xlane.xlu1 %2825 }
0x134b   :  { %v2828_v54 = vmul.f32 0.03125, %v2826_v53  ;;  %v2823_v21 = vpop.xlane.xlu0 %2822 }
0x134c   :  { %v2827_v55 = vmul.f32 0.03125, %v2823_v21 }
0x134d   :  { %v2830_v56 = vsub.f32 %v2816_v49, %v2828_v54 }
0x134e   :  { %v2829_v57 = vsub.f32 %v2815_v50, %v2827_v55 }
0x134f   :  { %v2832_v8 = vmul.f32 %v2830_v56, %v2830_v56 }
0x1350   :  { %v2831_v58 = vmul.f32 %v2829_v57, %v2829_v57 }
0x1351   :  { %v2836_v16 = vsel %vm73_vm0, %v2832_v8, 0.0 }
0x1352   :  { %v2833_v11 = vsel %vm73_vm0, %v2831_v58, 0.0  ;;  %v4063_v58 = vmov 0.0|0.0  }
0x1353   :  { %2834 = vadd.xlane.f32.xlu0 %v2833_v11  ;;  %3836 = vmatprep.subr.bf16.mxu1 %v4063_v58  ;;  %v4065_v11 = vmov 0.0  }
0x1357   :  { %2837 = vadd.xlane.f32.xlu0 %v2836_v16 }
0x13e0   :  { %v2835_v10 = vpop.xlane.xlu0 %2834 }
0x13e1   :  { %v2839_v12 = vmul.f32 0.03125, %v2835_v10  ;;  %v3105_v10 = vld [vmem:[%s4623_s3] sm:$0x3] }
0x13e3   :  { %v2841_v13 = vadd.f32 1e-05, %v2839_v12 }
0x13e4   :  { %v2838_v15 = vpop.xlane.xlu0 %2837 }
0x13e5   :  { %4018 = vrsqrt.f32 %v2841_v13  ;;  %v2840_v18 = vmul.f32 0.03125, %v2838_v15 }
0x13e7   :  { %v2842_v19 = vadd.f32 1e-05, %v2840_v18 }
0x13e9   :  { %4020 = vrsqrt.f32 %v2842_v19 }
0x13ef   :  { %v4019_v22 = vpop.eup %4018 }
0x13f0   :  { %v2845_v25 = vmul.f32 %v4019_v22, %v2829_v57 }
0x13f2   :  { %v2853_v27 = vmul.f32 %v3289_v23, %v2845_v25 }
0x13f3   :  { %v4021_v20 = vpop.eup %4020 }
0x13f4   :  { %v2846_v17 = vmul.f32 %v4021_v20, %v2830_v56  ;;  %v2861_v35 = vadd.f32 %v3290_v26, %v2853_v27 }
0x13f6   :  { %v2854_v36 = vmul.f32 %v3289_v23, %v2846_v17  ;;  %3663 = vmatprep.mubr.msk.f32.mxu1 %vm73_vm0, %v2861_v35 }
0x13f8   :  { %v2862_v28 = vadd.f32 %v3290_v26, %v2854_v36 }
0x13fa   :  { %3664 = vmatmul.mubr.msk.f32.vlgmr.msra.gmra.mrb[22].mxu1 %vm73_vm0, %v2862_v28 }
0x13fb   :  { %3689 = vmatprep.mubr.msk.f32.mxu1 %vm4064_vm5, %v4065_v11 }
0x14cd   :  { %v3665_v33 = vpop.f32.mrb[22].mxu1 }
0x14ce   :  { %v2954_v34 = vadd.f32 %v3665_v33, %v3296_v32  ;;  %v2948_v37 = vpop.f32.mrb[23].mxu1 }
0x14cf   :  { %v2949_v38 = vadd.f32 %v3296_v32, %v2948_v37 }
0x14d0   :  { %v2958_v39 = vmax.f32 %v2954_v34, 0.0 }
0x14d1   :  { %v2957_v24 = vmax.f32 %v2949_v38, 0.0 }
0x14d3   :  { %3682 = vmatprep.mubr.msk.f32.mxu0 %vm1452_vm4, %v2957_v24 }
0x14d4   :  { %3683 = vmatmul.mubr.msk.f32.vlgmr.msra.gmra.mrb[22].mxu0 %vm1452_vm4, %v2958_v39 }
0x15a7   :  { %v3684_v41 = vpop.f32.mrb[22].mxu0 }
0x15a8   :  { %v3048_v42 = vpop.f32.mrb[23].mxu0  ;;  %v3054_v43 = vadd.f32 %v3684_v41, %v3308_v40 }
0x15a9   :  { %v3049_v44 = vadd.f32 %v3308_v40, %v3048_v42 }
0x15aa   :  { %v3058_v47 = vadd.f32 %v3054_v43, %v2862_v28 }
0x15ab   :  { %v3057_v45 = vadd.f32 %v3049_v44, %v2861_v35 }
0x15ac   :  { %v3066_v48 = vsel %vm73_vm0, %v3058_v47, 0.0 }
0x15ad   :  { %v3063_v46 = vsel %vm73_vm0, %v3057_v45, 0.0 }
0x15ae   :  { %3064 = vadd.xlane.f32.xlu0 %v3063_v46 }
0x15b2   :  { %3067 = vadd.xlane.f32.xlu0 %v3066_v48 }
0x163b   :  { %v3065_v49 = vpop.xlane.xlu0 %3064 }
0x163c   :  { %v3069_v50 = vmul.f32 0.03125, %v3065_v49 }
0x163e   :  { %v3071_v51 = vsub.f32 %v3057_v45, %v3069_v50 }
0x163f   :  { %v3068_v52 = vpop.xlane.xlu0 %3067 }
0x1640   :  { %v3070_v53 = vmul.f32 0.03125, %v3068_v52  ;;  %v3073_v54 = vmul.f32 %v3071_v51, %v3071_v51 }
0x1642   :  { %v3072_v21 = vsub.f32 %v3058_v47, %v3070_v53  ;;  %v3075_v55 = vsel %vm73_vm0, %v3073_v54, 0.0 }
0x1643   :  { %3076 = vadd.xlane.f32.xlu0 %v3075_v55 }
0x1644   :  { %v3074_v56 = vmul.f32 %v3072_v21, %v3072_v21 }
0x1646   :  { %v3078_v57 = vsel %vm73_vm0, %v3074_v56, 0.0 }
0x1647   :  { %3079 = vadd.xlane.f32.xlu1 %v3078_v57 }
0x16d0   :  { %v3077_v8 = vpop.xlane.xlu0 %3076 }
0x16d1   :  { %v3081_v16 = vmul.f32 0.03125, %v3077_v8 }
0x16d3   :  { %v3083_v14 = vadd.f32 1e-05, %v3081_v16 }
0x16d4   :  { %v3080_v59 = vpop.xlane.xlu1 %3079 }
0x16d5   :  { %4022 = vrsqrt.f32 %v3083_v14  ;;  %v3082_v60 = vmul.f32 0.03125, %v3080_v59 }
0x16d7   :  { %v3084_v61 = vadd.f32 1e-05, %v3082_v60 }
0x16d9   :  { %4024 = vrsqrt.f32 %v3084_v61 }
0x16df   :  { %v4023_v62 = vpop.eup %4022 }
0x16e0   :  { %v3087_v63 = vmul.f32 %v4023_v62, %v3071_v51 }
0x16e2   :  { %v3095_v3 = vmul.f32 %v3313_v0, %v3087_v63 }
0x16e3   :  { %v4025_v1 = vpop.eup %4024 }
0x16e4   :  { %v3088_v2 = vmul.f32 %v4025_v1, %v3072_v21  ;;  %v3103_v6 = vadd.f32 %v3314_v4, %v3095_v3 }
0x16e6   :  { %v3096_v5 = vmul.f32 %v3313_v0, %v3088_v2 }
0x16e8   :  { %v3104_v7 = vadd.f32 %v3314_v4, %v3096_v5 }
0x16ea   :  { %v3837_v9 = vpack.c.bf16 %v3104_v7, %v3103_v6 }
0x16ec   :  { %3838 = vmatpush3.bf16.msra.mxu1 %v3837_v9 }
0x16ef   :  { %3690 = vmatmul.mubr.msk.f32.vlgmr.msra.gmra.mrb[24].mxu1 %vm249_vm3, %v3105_v10 }
0x17c2   :  { %v3175_v12 = vpop.f32.mrb[24].mxu1 }
0x17c3   :  { %3180 = vst.msk [vmem:[#allocation2] sm:$0x3] %vm3179_vm6, %v3175_v12  ;;  %v3691_v13 = vpop.f32.mrb[25].mxu1 }
0x17c4   :  { %4039 = shalt.err (!%p4036_p4)
}
0x17c5   :  { %s4040_s3 = scalar_lea.hbm %s4636_s16, 32 }
0x17c6   :  { %p4041_p5 = scmp.ne.s32.totalorder %s4636_s16, %s4040_s3  ;;  %p4044_p6 = scmp.lt.u32.totalorder %s4040_s3, %s4636_s16 }
0x17c8   :  { %p4046_p7 = pnand %p4044_p6, %p4041_p5 }
0x17ca   :  { %4049 = shalt.err (!%p4046_p7)
}
0x17cb   :  { %3190 = dma.vmem_to_hbm [thread:$0]  %s3188_s14, 32, %s4636_s16, [#allocation3]  }
0x17cc   :  { %4050 = dma.done.wait [#allocation3], 32  }
0x17cd   :  { %4051 = vsyncadd [#allocation3], 4294967264 }
0x17ce   :  { %3194 = vsyncpa [#allocation3], 1 }

</bundles_post_ra>
